<compile_context>
chip_gen: v7x
topology: tpu7x:2x2x1
jax: 0.10.0
libtpu: 0.0.40
codegen_flags: <defaults>
</compile_context>

<pallas_src>
import functools
import math

import jax
import jax.numpy as jnp
from jax.experimental import pallas as pl
from jax.experimental.pallas import tpu as pltpu


_VMEM_LIMIT = 64 * 1024 * 1024   # explicit scoped-VMEM budget


def _round_up(x, m):
    return (x + m - 1) // m * m


# ----------------------------------------------------------------------------
# Pallas matmul kernel: bf16 MXU, f32 accumulate, fused bias/BN + activation
# ----------------------------------------------------------------------------
def _mm_kernel(x_ref, w_ref, b_ref, o_ref, acc_ref, *, act):
    @pl.when(pl.program_id(1) == 0)
    def _init():
        acc_ref[...] = jnp.zeros_like(acc_ref)

    acc_ref[...] += jnp.dot(x_ref[...], w_ref[...],
                            preferred_element_type=jnp.float32)

    @pl.when(pl.program_id(1) == pl.num_programs(1) - 1)
    def _done():
        r = acc_ref[...] + b_ref[...]
        if act == "relu":
            r = jnp.maximum(r, 0.0)
        elif act == "sigmoid":
            r = jax.nn.sigmoid(r)
        o_ref[...] = r.astype(o_ref.dtype)


def pallas_matmul(x, w, b, act=None, out_dtype=jnp.float32):
    """out = act(x @ w + b); x:(M,K) w:(K,N) b:(N,).  bf16 operands, f32 acc."""
    M, K = x.shape
    N = w.shape[1]
    x = x.astype(jnp.bfloat16)
    w = w.astype(jnp.bfloat16)
    b2 = jnp.asarray(b, jnp.float32).reshape(1, N)

    if K <= 2048:
        tile_k, k_pad = K, K
    else:
        tile_k = 1024
        k_pad = _round_up(K, tile_k)
        x = jnp.pad(x, ((0, 0), (0, k_pad - K)))
        w = jnp.pad(w, ((0, k_pad - K), (0, 0)))

    tile_m = min(1024, _round_up(M, 8))
    m_pad = _round_up(M, tile_m)
    if m_pad != M:
        x = jnp.pad(x, ((0, m_pad - M), (0, 0)))

    grid = (m_pad // tile_m, k_pad // tile_k)
    out_bytes = jnp.dtype(out_dtype).itemsize
    cost = pl.CostEstimate(
        flops=2 * m_pad * k_pad * N,
        transcendentals=(m_pad * N) if act == "sigmoid" else 0,
        bytes_accessed=m_pad * k_pad * 2 + k_pad * N * 2 + m_pad * N * out_bytes)

    out = pl.pallas_call(
        functools.partial(_mm_kernel, act=act),
        out_shape=jax.ShapeDtypeStruct((m_pad, N), out_dtype),
        grid=grid,
        in_specs=[
            pl.BlockSpec((tile_m, tile_k), lambda i, k: (i, k)),
            pl.BlockSpec((tile_k, N), lambda i, k: (k, 0)),
            pl.BlockSpec((1, N), lambda i, k: (0, 0)),
        ],
        out_specs=pl.BlockSpec((tile_m, N), lambda i, k: (i, 0)),
        scratch_shapes=[pltpu.VMEM((tile_m, N), jnp.float32)],
        compiler_params=pltpu.CompilerParams(
            dimension_semantics=("parallel", "arbitrary"),
            vmem_limit_bytes=_VMEM_LIMIT),
        cost_estimate=cost,
    )(x, w, b2)
    return out[:M]


# ----------------------------------------------------------------------------
# Fused 3x3x3 conv kernel (stride 1, pad 1): no im2col materialization.
# Grid = (B, Do, kd); each step loads one padded depth slab, does 9 tap matmuls.
# ----------------------------------------------------------------------------
def _fused_conv3_kernel(x_ref, w_ref, b_ref, o_ref, acc_ref, *, H, W, Cin, act):
    kd = pl.program_id(2)

    @pl.when(kd == 0)
    def _init():
        acc_ref[...] = jnp.zeros_like(acc_ref)

    part = None
    for j in range(3):
        for l in range(3):
            xs = x_ref[0, j:j + H, l:l + W, :].reshape(H * W, Cin)
            d = jnp.dot(xs, w_ref[0, 3 * j + l],
                        preferred_element_type=jnp.float32)
            part = d if part is None else part + d
    acc_ref[...] += part

    @pl.when(kd == pl.num_programs(2) - 1)
    def _done():
        r = acc_ref[...] + b_ref[...]
        if act == "relu":
            r = jnp.maximum(r, 0.0)
        elif act == "sigmoid":
            r = jax.nn.sigmoid(r)
        o_ref[0] = r.astype(o_ref.dtype)


def _conv3d_fused3(x, w, b=None, bn=None, act=None, out_dtype=jnp.bfloat16):
    """3x3x3, stride 1, pad 1 conv (+ folded eval-BN + act), channels-last."""
    B, D, H, W, Cin = x.shape
    Cout = w.shape[0]
    x = x.astype(jnp.bfloat16)
    xp = jnp.pad(x, ((0, 0), (1, 1), (1, 1), (1, 1), (0, 0)))
    xp = xp.reshape(B * (D + 2), H + 2, W + 2, Cin)          # free metadata reshape

    # weight: (Cout,Cin,kd,kh,kw) -> (kd,kh,kw,Cin,Cout)
    w_t = jnp.transpose(w, (2, 3, 4, 1, 0)).astype(jnp.float32)
    bias = (b if b is not None else jnp.zeros((Cout,), jnp.float32)).astype(jnp.float32)
    if bn is not None:
        scale = bn["gamma"] / jnp.sqrt(bn["var"] + 1e-5)
        shift = bn["beta"] - bn["mean"] * scale
        w_t = w_t * scale
        bias = bias * scale + shift
    w_t = w_t.reshape(3, 9, Cin, Cout).astype(jnp.bfloat16)
    b2 = bias.reshape(1, Cout)

    HW = H * W
    out_bytes = jnp.dtype(out_dtype).itemsize
    cost = pl.CostEstimate(
        flops=2 * B * D * HW * 27 * Cin * Cout,
        transcendentals=0,
        bytes_accessed=(B * D * 3 * (H + 2) * (W + 2) * Cin * 2
                        + B * D * HW * Cout * out_bytes + 27 * Cin * Cout * 2))

    out = pl.pallas_call(
        functools.partial(_fused_conv3_kernel, H=H, W=W, Cin=Cin, act=act),
        out_shape=jax.ShapeDtypeStruct((B * D, HW, Cout), out_dtype),
        grid=(B, D, 3),
        in_specs=[
            pl.BlockSpec((1, H + 2, W + 2, Cin),
                         lambda bi, di, ki: (bi * (D + 2) + di + ki, 0, 0, 0)),
            pl.BlockSpec((1, 9, Cin, Cout), lambda bi, di, ki: (ki, 0, 0, 0)),
            pl.BlockSpec((1, Cout), lambda bi, di, ki: (0, 0)),
        ],
        out_specs=pl.BlockSpec((1, HW, Cout), lambda bi, di, ki: (bi * D + di, 0, 0)),
        scratch_shapes=[pltpu.VMEM((HW, Cout), jnp.float32)],
        compiler_params=pltpu.CompilerParams(
            dimension_semantics=("parallel", "parallel", "arbitrary"),
            vmem_limit_bytes=_VMEM_LIMIT),
        cost_estimate=cost,
    )(xp, w_t, b2)
    return out.reshape(B, D, H, W, Cout)


# ----------------------------------------------------------------------------
# im2col conv path (general stride / padding / tiny channels) + 1x1 fast path
# ----------------------------------------------------------------------------
def _conv3d_im2col(x, w, b=None, stride=1, padding=0, bn=None, act=None,
                   out_dtype=jnp.bfloat16):
    B, D, H, W, Cin = x.shape
    Cout, _, k, _, _ = w.shape
    x = x.astype(jnp.bfloat16)

    if k == 1 and stride == 1 and padding == 0:
        Do, Ho, Wo = D, H, W
        patches = x.reshape(-1, Cin)
        w_mat = w.reshape(Cout, Cin).T.astype(jnp.float32)        # (Cin, Cout)
    else:
        xp = jnp.pad(x, ((0, 0), (padding,) * 2, (padding,) * 2,
                         (padding,) * 2, (0, 0)))
        Do = (D + 2 * padding - k) // stride + 1
        Ho = (H + 2 * padding - k) // stride + 1
        Wo = (W + 2 * padding - k) // stride + 1
        taps = []
        for i in range(k):
            for j in range(k):
                for l in range(k):
                    taps.append(xp[:,
                                   i:i + (Do - 1) * stride + 1:stride,
                                   j:j + (Ho - 1) * stride + 1:stride,
                                   l:l + (Wo - 1) * stride + 1:stride, :])
        p = jnp.stack(taps, axis=4)                  # (B,Do,Ho,Wo,k^3,Cin) bf16
        patches = p.reshape(B * Do * Ho * Wo, k * k * k * Cin)
        w_mat = jnp.transpose(w, (2, 3, 4, 1, 0)).reshape(-1, Cout).astype(jnp.float32)

    bias = (b if b is not None else jnp.zeros((Cout,), jnp.float32)).astype(jnp.float32)
    if bn is not None:
        scale = bn["gamma"] / jnp.sqrt(bn["var"] + 1e-5)
        shift = bn["beta"] - bn["mean"] * scale
        w_mat = w_mat * scale[None, :]
        bias = bias * scale + shift

    y = pallas_matmul(patches, w_mat, bias, act=act, out_dtype=out_dtype)
    return y.reshape(B, Do, Ho, Wo, Cout)


def conv3d_cl(x, w, b=None, stride=1, padding=0, bn=None, act=None,
              out_dtype=jnp.bfloat16):
    """Channels-last Conv3d (+ folded eval-BN + activation), x: (B,D,H,W,Cin)."""
    Cin = x.shape[-1]
    W = x.shape[3]
    k = w.shape[2]
    if k == 3 and stride == 1 and padding == 1 and Cin >= 16 and W % 16 == 0:
        return _conv3d_fused3(x, w, b, bn, act, out_dtype)
    return _conv3d_im2col(x, w, b, stride, padding, bn, act, out_dtype)


# ----------------------------------------------------------------------------
# CBAM elementwise / reduction kernels (channels-last: blocks are (1, S, C))
# ----------------------------------------------------------------------------
def _ch_pool_kernel(x_ref, avg_ref, max_ref):
    x = x_ref[0].astype(jnp.float32)                  # (S, C)
    avg_ref[0] = jnp.mean(x, axis=0, keepdims=True)   # (1, C)
    max_ref[0] = jnp.max(x, axis=0, keepdims=True)    # (1, C)


def channel_pool(xf):
    """xf: (B, S, C) -> (avg, max), each (B, C) f32 (global spatial pool)."""
    B, S, C = xf.shape
    avg, mx = pl.pallas_call(
        _ch_pool_kernel,
        out_shape=(jax.ShapeDtypeStruct((B, 1, C), jnp.float32),
                   jax.ShapeDtypeStruct((B, 1, C), jnp.float32)),
        grid=(B,),
        in_specs=[pl.BlockSpec((1, S, C), lambda b: (b, 0, 0))],
        out_specs=(pl.BlockSpec((1, 1, C), lambda b: (b, 0, 0)),
                   pl.BlockSpec((1, 1, C), lambda b: (b, 0, 0))),
        compiler_params=pltpu.CompilerParams(
            dimension_semantics=("parallel",), vmem_limit_bytes=_VMEM_LIMIT),
    )(xf)
    return avg.reshape(B, C), mx.reshape(B, C)


def _sp_pool_kernel(x_ref, ch_ref, o_ref):
    # Fused: ch_out = ch_att * x ; then channel-wise max / mean -> (S, 2).
    x = x_ref[0].astype(jnp.float32)                  # (S, C)
    ch = ch_ref[0].astype(jnp.float32)                # (1, C)
    w = x * ch
    inv_c = 1.0 / x.shape[1]
    # channel 0 = max, channel 1 = mean (matches torch.cat([max, avg], dim=1))
    o_ref[0, :, 0:1] = jnp.max(w, axis=1, keepdims=True).astype(o_ref.dtype)
    o_ref[0, :, 1:2] = (jnp.sum(w, axis=1, keepdims=True) * inv_c).astype(o_ref.dtype)


def _combine_kernel(x_ref, sp_ref, o_ref):
    # out = sigmoid(sp_logits) * x + x
    x = x_ref[0].astype(jnp.float32)                     # (S, C)
    sp = jax.nn.sigmoid(sp_ref[0].astype(jnp.float32))   # (S, 1)
    o_ref[0] = (x * sp + x).astype(o_ref.dtype)


# ----------------------------------------------------------------------------
# Module forward passes (channels-last internally)
# ----------------------------------------------------------------------------
def rescbam_forward(x, p):
    B, D, H, W, C = x.shape
    S = D * H * W
    xf = x.reshape(B, S, C)

    # Channel attention: global avg/max pool (Pallas), then ONE stacked
    # (2B, C) Linear->Linear chain shared by avg and max branches.
    avg, mx = channel_pool(xf)                                  # (B, C) each
    hid = p["ch_w1"].shape[0]
    z = jnp.concatenate([avg, mx], axis=0)                      # (2B, C)
    h = pallas_matmul(z, p["ch_w1"].T, jnp.zeros((hid,), jnp.float32))
    h = pallas_matmul(h, p["ch_w2"].T, jnp.zeros((C,), jnp.float32))  # (2B, C)
    ch_att = jax.nn.softmax(h[:B] + h[B:], axis=1)              # (B, C)

    # Fused: apply channel attention + channel-wise max/mean -> (B, S, 2) bf16.
    spcat = pl.pallas_call(
        _sp_pool_kernel,
        out_shape=jax.ShapeDtypeStruct((B, S, 2), jnp.bfloat16),
        grid=(B,),
        in_specs=[pl.BlockSpec((1, S, C), lambda b: (b, 0, 0)),
                  pl.BlockSpec((1, 1, C), lambda b: (b, 0, 0))],
        out_specs=pl.BlockSpec((1, S, 2), lambda b: (b, 0, 0)),
        compiler_params=pltpu.CompilerParams(
            dimension_semantics=("parallel",), vmem_limit_bytes=_VMEM_LIMIT),
    )(xf, ch_att.reshape(B, 1, C))

    # Spatial conv (2 -> 1 channels, k=3, pad=1) on the small 2-channel maps.
    # TODO(synk): fold these 54 taps into the combine kernel on the VPU.
    sp_in = spcat.reshape(B, D, H, W, 2)
    sp_logits = conv3d_cl(sp_in, p["sp_w"], None, stride=1, padding=1,
                          out_dtype=jnp.float32)                # (B, D, H, W, 1)

    # Fused: out = sigmoid(sp) * x + x
    out = pl.pallas_call(
        _combine_kernel,
        out_shape=jax.ShapeDtypeStruct((B, S, C), jnp.bfloat16),
        grid=(B,),
        in_specs=[pl.BlockSpec((1, S, C), lambda b: (b, 0, 0)),
                  pl.BlockSpec((1, S, 1), lambda b: (b, 0, 0))],
        out_specs=pl.BlockSpec((1, S, C), lambda b: (b, 0, 0)),
        compiler_params=pltpu.CompilerParams(
            dimension_semantics=("parallel",), vmem_limit_bytes=_VMEM_LIMIT),
    )(xf, sp_logits.reshape(B, S, 1))
    return out.reshape(B, D, H, W, C)


def residual_block_forward(x, p):
    out1 = conv3d_cl(x, p["conv3"]["w"], p["conv3"]["b"], 1, 0, p["conv3"]["bn"], "relu")
    out = conv3d_cl(x, p["conv1"]["w"], p["conv1"]["b"], 1, 1, p["conv1"]["bn"], "relu")
    out = conv3d_cl(out, p["conv2"]["w"], p["conv2"]["b"], 1, 1, p["conv2"]["bn"], "relu")
    return out + out1


def convres_forward(params, x):
    # Model boundary: PyTorch NCDHW -> channels-last NDHWC (single relayout).
    x = jnp.transpose(x, (0, 2, 3, 4, 1))
    out = conv3d_cl(x, params["conv1"]["w"], params["conv1"]["b"], 1, 1,
                    params["conv1"]["bn"], "relu")
    out = conv3d_cl(out, params["conv2"]["w"], params["conv2"]["b"], 1, 1,
                    params["conv2"]["bn"], "relu")
    out = rescbam_forward(out, params["first_cbam"])
    for stage in params["stages"]:
        out = conv3d_cl(out, stage["pool"]["w"], None, 2, 1, stage["pool"]["bn"], "relu")
        for blk in stage["blocks"]:
            out = residual_block_forward(out, blk)
        out = rescbam_forward(out, stage["cbam"])
        # Dropout(0.3): identity in eval mode.
    B, C = out.shape[0], out.shape[-1]
    xf = out.reshape(B, -1, C)
    _, mx = channel_pool(xf)           # AdaptiveMaxPool3d(1) == global max (Pallas)
    logits = pallas_matmul(mx, params["fc7"]["w"].T, params["fc7"]["b"],
                           act="sigmoid", out_dtype=jnp.float32)
    return logits                       # (B, 6)


# ----------------------------------------------------------------------------
# Deterministic parameter initialization (shapes mirror the PyTorch module)
# ----------------------------------------------------------------------------
def init_params(key, config):
    keys = iter(jax.random.split(key, 256))

    def nxt():
        return next(keys)

    def bn_p(c):
        return {"gamma": jnp.ones((c,), jnp.float32),
                "beta": jnp.zeros((c,), jnp.float32),
                "mean": jnp.zeros((c,), jnp.float32),
                "var": jnp.ones((c,), jnp.float32)}

    def conv_p(cout, cin, k, bias=True, bn=True):
        fan = cin * k ** 3
        d = {"w": jax.random.normal(nxt(), (cout, cin, k, k, k), jnp.float32) / math.sqrt(fan)}
        d["b"] = (jax.random.normal(nxt(), (cout,), jnp.float32) * 0.01) if bias else None
        d["bn"] = bn_p(cout) if bn else None
        return d

    def cbam_p(c):
        h = c // 4
        return {"ch_w1": jax.random.normal(nxt(), (h, c), jnp.float32) / math.sqrt(c),
                "ch_w2": jax.random.normal(nxt(), (c, h), jnp.float32) / math.sqrt(max(h, 1)),
                "sp_w": jax.random.normal(nxt(), (1, 2, 3, 3, 3), jnp.float32) / math.sqrt(54)}

    params = {"conv1": conv_p(32, 1, 3),
              "conv2": conv_p(32, 32, 3),
              "first_cbam": cbam_p(32)}
    last = 32
    stages = []
    for stage in config:
        sp = {"pool": conv_p(last, last, 3, bias=False), "blocks": []}
        for ch in stage:
            sp["blocks"].append({"conv1": conv_p(ch, last, 3),
                                 "conv2": conv_p(ch, ch, 3),
                                 "conv3": conv_p(ch, last, 1)})
            last = ch
        sp["cbam"] = cbam_p(last)
        stages.append(sp)
    params["stages"] = stages
    params["fc7"] = {"w": jax.random.normal(nxt(), (6, last), jnp.float32) / math.sqrt(last),
                     "b": jnp.zeros((6,), jnp.float32)}
    return params


# ----------------------------------------------------------------------------
if __name__ == "__main__":
    # --- numeric sanity check: fused conv path vs im2col path vs XLA conv ---
    ck = jax.random.split(jax.random.PRNGKey(1), 3)
    cx = jax.random.normal(ck[0], (1, 4, 8, 16, 16), jnp.float32)
    cw = jax.random.normal(ck[1], (16, 16, 3, 3, 3), jnp.float32) * 0.1
    cb = jax.random.normal(ck[2], (16,), jnp.float32) * 0.1
    y_fused = jax.block_until_ready(
        _conv3d_fused3(cx, cw, cb, None, None, jnp.float32))
    y_im2col = jax.block_until_ready(
        _conv3d_im2col(cx, cw, cb, 1, 1, None, None, jnp.float32))
    y_ref = jax.lax.conv_general_dilated(
        cx, jnp.transpose(cw, (2, 3, 4, 1, 0)), (1, 1, 1),
        ((1, 1), (1, 1), (1, 1)),
        dimension_numbers=("NDHWC", "DHWIO", "NDHWC")) + cb
    tol = 5e-2 * float(jnp.max(jnp.abs(y_ref))) + 1e-3
    assert float(jnp.max(jnp.abs(y_fused - y_ref))) < tol, "fused conv mismatch"
    assert float(jnp.max(jnp.abs(y_im2col - y_ref))) < tol, "im2col conv mismatch"

    # --- full model forward ---
    config = [[8], [16]]  # small synthetic config (original uses wider stages)
    key = jax.random.PRNGKey(0)
    pkey, xkey = jax.random.split(key)
    params = init_params(pkey, config)
    x = jax.random.normal(xkey, (2, 1, 16, 16, 16), jnp.float32)  # NCDHW

    fwd = jax.jit(convres_forward)
    out = jax.block_until_ready(fwd(params, x))
    assert out.shape == (2, 6), out.shape
    assert bool(jnp.all(jnp.isfinite(out)))
    print("KERNEL_OK")
</pallas_src>

<mosaic_0001>
module attributes {stable_mosaic.version = 11 : i64} {
  func.func @_fused_conv3_kernel(%arg0: i32, %arg1: i32, %arg2: i32, %arg3: memref<1x10x18x16xbf16, #tpu.memory_space<vmem>>, %arg4: memref<1x9x16x16xbf16, #tpu.memory_space<vmem>>, %arg5: memref<1x16xf32, #tpu.memory_space<vmem>>, %arg6: memref<1x128x16xf32, #tpu.memory_space<vmem>>, %arg7: memref<128x16xf32, #tpu.memory_space<vmem>>) attributes {dimension_semantics = [#tpu.dimension_semantics<parallel>, #tpu.dimension_semantics<parallel>, #tpu.dimension_semantics<arbitrary>], iteration_bounds = array<i64: 1, 4, 3>, scalar_prefetch = 0 : i64, scratch_operands = 1 : i64, tpu.core_type = #tpu.core_type<tc>, window_params = [{transform_indices = @transform_0, window_bounds = array<i64: 1, 10, 18, 16>}, {transform_indices = @transform_1, window_bounds = array<i64: 1, 9, 16, 16>}, {pipeline_mode = #tpu.pipeline_mode<synchronous>, transform_indices = @transform_2, window_bounds = array<i64: 1, 16>}, {transform_indices = @transform_3, window_bounds = array<i64: 1, 128, 16>}]} {
    %c0_i32 = arith.constant 0 : i32
    %0 = arith.cmpi eq, %arg2, %c0_i32 : i32
    %1 = arith.extui %0 : i1 to i32
    %c0_i32_0 = arith.constant 0 : i32
    %2 = arith.cmpi ne, %1, %c0_i32_0 : i32
    scf.if %2 {
      %cst_77 = arith.constant 0.000000e+00 : f32
      %71 = vector.broadcast %cst_77 : f32 to vector<128x16xf32>
      %c0_78 = arith.constant 0 : index
      %c0_79 = arith.constant 0 : index
      %72 = vector.load %arg7[%c0_78, %c0_79] : memref<128x16xf32, #tpu.memory_space<vmem>>, vector<128x16xf32>
      tpu.vector_store %arg7[%c0_78, %c0_79], %71 {strides = array<i32>} : memref<128x16xf32, #tpu.memory_space<vmem>>, vector<128x16xf32>,
    } else {
    }
    %c0 = arith.constant 0 : index
    %c0_1 = arith.constant 0 : index
    %c0_2 = arith.constant 0 : index
    %c0_3 = arith.constant 0 : index
    %3 = vector.load %arg3[%c0, %c0_1, %c0_2, %c0_3] : memref<1x10x18x16xbf16, #tpu.memory_space<vmem>>, vector<1x8x16x16xbf16>
    %4 = vector.shape_cast %3 : vector<1x8x16x16xbf16> to vector<8x16x16xbf16>
    %5 = vector.shape_cast %4 : vector<8x16x16xbf16> to vector<128x16xbf16>
    %c0_4 = arith.constant 0 : index
    %c0_5 = arith.constant 0 : index
    %c0_6 = arith.constant 0 : index
    %c0_7 = arith.constant 0 : index
    %6 = vector.load %arg4[%c0_4, %c0_5, %c0_6, %c0_7] : memref<1x9x16x16xbf16, #tpu.memory_space<vmem>>, vector<1x1x16x16xbf16>
    %7 = vector.shape_cast %6 : vector<1x1x16x16xbf16> to vector<16x16xbf16>
    %cst = arith.constant dense<0.000000e+00> : vector<128x16xf32>
    %8 = tpu.matmul %5, %7, %cst {dimension_numbers = #tpu.dot_dimension_numbers<[1], [0], [0], [1], [0, 0, 1, 1], [], []>} : vector<128x16xbf16>, vector<16x16xbf16>, vector<128x16xf32> -> vector<128x16xf32>
    %c0_8 = arith.constant 0 : index
    %c0_9 = arith.constant 0 : index
    %c1 = arith.constant 1 : index
    %c0_10 = arith.constant 0 : index
    %9 = vector.load %arg3[%c0_8, %c0_9, %c1, %c0_10] : memref<1x10x18x16xbf16, #tpu.memory_space<vmem>>, vector<1x8x16x16xbf16>
    %10 = vector.shape_cast %9 : vector<1x8x16x16xbf16> to vector<8x16x16xbf16>
    %11 = vector.shape_cast %10 : vector<8x16x16xbf16> to vector<128x16xbf16>
    %c0_11 = arith.constant 0 : index
    %c1_12 = arith.constant 1 : index
    %c0_13 = arith.constant 0 : index
    %c0_14 = arith.constant 0 : index
    %12 = vector.load %arg4[%c0_11, %c1_12, %c0_13, %c0_14] : memref<1x9x16x16xbf16, #tpu.memory_space<vmem>>, vector<1x1x16x16xbf16>
    %13 = vector.shape_cast %12 : vector<1x1x16x16xbf16> to vector<16x16xbf16>
    %cst_15 = arith.constant dense<0.000000e+00> : vector<128x16xf32>
    %14 = tpu.matmul %11, %13, %cst_15 {dimension_numbers = #tpu.dot_dimension_numbers<[1], [0], [0], [1], [0, 0, 1, 1], [], []>} : vector<128x16xbf16>, vector<16x16xbf16>, vector<128x16xf32> -> vector<128x16xf32>
    %15 = arith.addf %8, %14 : vector<128x16xf32>
    %c0_16 = arith.constant 0 : index
    %c0_17 = arith.constant 0 : index
    %c2 = arith.constant 2 : index
    %c0_18 = arith.constant 0 : index
    %16 = vector.load %arg3[%c0_16, %c0_17, %c2, %c0_18] : memref<1x10x18x16xbf16, #tpu.memory_space<vmem>>, vector<1x8x16x16xbf16>
    %17 = vector.shape_cast %16 : vector<1x8x16x16xbf16> to vector<8x16x16xbf16>
    %18 = vector.shape_cast %17 : vector<8x16x16xbf16> to vector<128x16xbf16>
    %c0_19 = arith.constant 0 : index
    %c2_20 = arith.constant 2 : index
    %c0_21 = arith.constant 0 : index
    %c0_22 = arith.constant 0 : index
    %19 = vector.load %arg4[%c0_19, %c2_20, %c0_21, %c0_22] : memref<1x9x16x16xbf16, #tpu.memory_space<vmem>>, vector<1x1x16x16xbf16>
    %20 = vector.shape_cast %19 : vector<1x1x16x16xbf16> to vector<16x16xbf16>
    %cst_23 = arith.constant dense<0.000000e+00> : vector<128x16xf32>
    %21 = tpu.matmul %18, %20, %cst_23 {dimension_numbers = #tpu.dot_dimension_numbers<[1], [0], [0], [1], [0, 0, 1, 1], [], []>} : vector<128x16xbf16>, vector<16x16xbf16>, vector<128x16xf32> -> vector<128x16xf32>
    %22 = arith.addf %15, %21 : vector<128x16xf32>
    %c0_24 = arith.constant 0 : index
    %c1_25 = arith.constant 1 : index
    %c0_26 = arith.constant 0 : index
    %c0_27 = arith.constant 0 : index
    %23 = vector.load %arg3[%c0_24, %c1_25, %c0_26, %c0_27] : memref<1x10x18x16xbf16, #tpu.memory_space<vmem>>, vector<1x8x16x16xbf16>
    %24 = vector.shape_cast %23 : vector<1x8x16x16xbf16> to vector<8x16x16xbf16>
    %25 = vector.shape_cast %24 : vector<8x16x16xbf16> to vector<128x16xbf16>
    %c0_28 = arith.constant 0 : index
    %c3 = arith.constant 3 : index
    %c0_29 = arith.constant 0 : index
    %c0_30 = arith.constant 0 : index
    %26 = vector.load %arg4[%c0_28, %c3, %c0_29, %c0_30] : memref<1x9x16x16xbf16, #tpu.memory_space<vmem>>, vector<1x1x16x16xbf16>
    %27 = vector.shape_cast %26 : vector<1x1x16x16xbf16> to vector<16x16xbf16>
    %cst_31 = arith.constant dense<0.000000e+00> : vector<128x16xf32>
    %28 = tpu.matmul %25, %27, %cst_31 {dimension_numbers = #tpu.dot_dimension_numbers<[1], [0], [0], [1], [0, 0, 1, 1], [], []>} : vector<128x16xbf16>, vector<16x16xbf16>, vector<128x16xf32> -> vector<128x16xf32>
    %29 = arith.addf %22, %28 : vector<128x16xf32>
    %c0_32 = arith.constant 0 : index
    %c1_33 = arith.constant 1 : index
    %c1_34 = arith.constant 1 : index
    %c0_35 = arith.constant 0 : index
    %30 = vector.load %arg3[%c0_32, %c1_33, %c1_34, %c0_35] : memref<1x10x18x16xbf16, #tpu.memory_space<vmem>>, vector<1x8x16x16xbf16>
    %31 = vector.shape_cast %30 : vector<1x8x16x16xbf16> to vector<8x16x16xbf16>
    %32 = vector.shape_cast %31 : vector<8x16x16xbf16> to vector<128x16xbf16>
    %c0_36 = arith.constant 0 : index
    %c4 = arith.constant 4 : index
    %c0_37 = arith.constant 0 : index
    %c0_38 = arith.constant 0 : index
    %33 = vector.load %arg4[%c0_36, %c4, %c0_37, %c0_38] : memref<1x9x16x16xbf16, #tpu.memory_space<vmem>>, vector<1x1x16x16xbf16>
    %34 = vector.shape_cast %33 : vector<1x1x16x16xbf16> to vector<16x16xbf16>
    %cst_39 = arith.constant dense<0.000000e+00> : vector<128x16xf32>
    %35 = tpu.matmul %32, %34, %cst_39 {dimension_numbers = #tpu.dot_dimension_numbers<[1], [0], [0], [1], [0, 0, 1, 1], [], []>} : vector<128x16xbf16>, vector<16x16xbf16>, vector<128x16xf32> -> vector<128x16xf32>
    %36 = arith.addf %29, %35 : vector<128x16xf32>
    %c0_40 = arith.constant 0 : index
    %c1_41 = arith.constant 1 : index
    %c2_42 = arith.constant 2 : index
    %c0_43 = arith.constant 0 : index
    %37 = vector.load %arg3[%c0_40, %c1_41, %c2_42, %c0_43] : memref<1x10x18x16xbf16, #tpu.memory_space<vmem>>, vector<1x8x16x16xbf16>
    %38 = vector.shape_cast %37 : vector<1x8x16x16xbf16> to vector<8x16x16xbf16>
    %39 = vector.shape_cast %38 : vector<8x16x16xbf16> to vector<128x16xbf16>
    %c0_44 = arith.constant 0 : index
    %c5 = arith.constant 5 : index
    %c0_45 = arith.constant 0 : index
    %c0_46 = arith.constant 0 : index
    %40 = vector.load %arg4[%c0_44, %c5, %c0_45, %c0_46] : memref<1x9x16x16xbf16, #tpu.memory_space<vmem>>, vector<1x1x16x16xbf16>
    %41 = vector.shape_cast %40 : vector<1x1x16x16xbf16> to vector<16x16xbf16>
    %cst_47 = arith.constant dense<0.000000e+00> : vector<128x16xf32>
    %42 = tpu.matmul %39, %41, %cst_47 {dimension_numbers = #tpu.dot_dimension_numbers<[1], [0], [0], [1], [0, 0, 1, 1], [], []>} : vector<128x16xbf16>, vector<16x16xbf16>, vector<128x16xf32> -> vector<128x16xf32>
    %43 = arith.addf %36, %42 : vector<128x16xf32>
    %c0_48 = arith.constant 0 : index
    %c2_49 = arith.constant 2 : index
    %c0_50 = arith.constant 0 : index
    %c0_51 = arith.constant 0 : index
    %44 = vector.load %arg3[%c0_48, %c2_49, %c0_50, %c0_51] : memref<1x10x18x16xbf16, #tpu.memory_space<vmem>>, vector<1x8x16x16xbf16>
    %45 = vector.shape_cast %44 : vector<1x8x16x16xbf16> to vector<8x16x16xbf16>
    %46 = vector.shape_cast %45 : vector<8x16x16xbf16> to vector<128x16xbf16>
    %c0_52 = arith.constant 0 : index
    %c6 = arith.constant 6 : index
    %c0_53 = arith.constant 0 : index
    %c0_54 = arith.constant 0 : index
    %47 = vector.load %arg4[%c0_52, %c6, %c0_53, %c0_54] : memref<1x9x16x16xbf16, #tpu.memory_space<vmem>>, vector<1x1x16x16xbf16>
    %48 = vector.shape_cast %47 : vector<1x1x16x16xbf16> to vector<16x16xbf16>
    %cst_55 = arith.constant dense<0.000000e+00> : vector<128x16xf32>
    %49 = tpu.matmul %46, %48, %cst_55 {dimension_numbers = #tpu.dot_dimension_numbers<[1], [0], [0], [1], [0, 0, 1, 1], [], []>} : vector<128x16xbf16>, vector<16x16xbf16>, vector<128x16xf32> -> vector<128x16xf32>
    %50 = arith.addf %43, %49 : vector<128x16xf32>
    %c0_56 = arith.constant 0 : index
    %c2_57 = arith.constant 2 : index
    %c1_58 = arith.constant 1 : index
    %c0_59 = arith.constant 0 : index
    %51 = vector.load %arg3[%c0_56, %c2_57, %c1_58, %c0_59] : memref<1x10x18x16xbf16, #tpu.memory_space<vmem>>, vector<1x8x16x16xbf16>
    %52 = vector.shape_cast %51 : vector<1x8x16x16xbf16> to vector<8x16x16xbf16>
    %53 = vector.shape_cast %52 : vector<8x16x16xbf16> to vector<128x16xbf16>
    %c0_60 = arith.constant 0 : index
    %c7 = arith.constant 7 : index
    %c0_61 = arith.constant 0 : index
    %c0_62 = arith.constant 0 : index
    %54 = vector.load %arg4[%c0_60, %c7, %c0_61, %c0_62] : memref<1x9x16x16xbf16, #tpu.memory_space<vmem>>, vector<1x1x16x16xbf16>
    %55 = vector.shape_cast %54 : vector<1x1x16x16xbf16> to vector<16x16xbf16>
    %cst_63 = arith.constant dense<0.000000e+00> : vector<128x16xf32>
    %56 = tpu.matmul %53, %55, %cst_63 {dimension_numbers = #tpu.dot_dimension_numbers<[1], [0], [0], [1], [0, 0, 1, 1], [], []>} : vector<128x16xbf16>, vector<16x16xbf16>, vector<128x16xf32> -> vector<128x16xf32>
    %57 = arith.addf %50, %56 : vector<128x16xf32>
    %c0_64 = arith.constant 0 : index
    %c2_65 = arith.constant 2 : index
    %c2_66 = arith.constant 2 : index
    %c0_67 = arith.constant 0 : index
    %58 = vector.load %arg3[%c0_64, %c2_65, %c2_66, %c0_67] : memref<1x10x18x16xbf16, #tpu.memory_space<vmem>>, vector<1x8x16x16xbf16>
    %59 = vector.shape_cast %58 : vector<1x8x16x16xbf16> to vector<8x16x16xbf16>
    %60 = vector.shape_cast %59 : vector<8x16x16xbf16> to vector<128x16xbf16>
    %c0_68 = arith.constant 0 : index
    %c8 = arith.constant 8 : index
    %c0_69 = arith.constant 0 : index
    %c0_70 = arith.constant 0 : index
    %61 = vector.load %arg4[%c0_68, %c8, %c0_69, %c0_70] : memref<1x9x16x16xbf16, #tpu.memory_space<vmem>>, vector<1x1x16x16xbf16>
    %62 = vector.shape_cast %61 : vector<1x1x16x16xbf16> to vector<16x16xbf16>
    %cst_71 = arith.constant dense<0.000000e+00> : vector<128x16xf32>
    %63 = tpu.matmul %60, %62, %cst_71 {dimension_numbers = #tpu.dot_dimension_numbers<[1], [0], [0], [1], [0, 0, 1, 1], [], []>} : vector<128x16xbf16>, vector<16x16xbf16>, vector<128x16xf32> -> vector<128x16xf32>
    %64 = arith.addf %57, %63 : vector<128x16xf32>
    %c0_72 = arith.constant 0 : index
    %c0_73 = arith.constant 0 : index
    %65 = vector.load %arg7[%c0_72, %c0_73] : memref<128x16xf32, #tpu.memory_space<vmem>>, vector<128x16xf32>
    %66 = arith.addf %65, %64 : vector<128x16xf32>
    %c0_74 = arith.constant 0 : index
    %c0_75 = arith.constant 0 : index
    %67 = vector.load %arg7[%c0_74, %c0_75] : memref<128x16xf32, #tpu.memory_space<vmem>>, vector<128x16xf32>
    tpu.vector_store %arg7[%c0_74, %c0_75], %66 {strides = array<i32>} : memref<128x16xf32, #tpu.memory_space<vmem>>, vector<128x16xf32>,
    %c2_i32 = arith.constant 2 : i32
    %68 = arith.cmpi eq, %arg2, %c2_i32 : i32
    %69 = arith.extui %68 : i1 to i32
    %c0_i32_76 = arith.constant 0 : i32
    %70 = arith.cmpi ne, %69, %c0_i32_76 : i32
    scf.if %70 {
      %c0_77 = arith.constant 0 : index
      %c0_78 = arith.constant 0 : index
      %71 = vector.load %arg7[%c0_77, %c0_78] : memref<128x16xf32, #tpu.memory_space<vmem>>, vector<128x16xf32>
      %c0_79 = arith.constant 0 : index
      %c0_80 = arith.constant 0 : index
      %72 = vector.load %arg5[%c0_79, %c0_80] : memref<1x16xf32, #tpu.memory_space<vmem>>, vector<1x16xf32>
      %73 = vector.broadcast %72 : vector<1x16xf32> to vector<128x16xf32>
      %74 = arith.addf %71, %73 : vector<128x16xf32>
      %c0_81 = arith.constant 0 : index
      %c0_82 = arith.constant 0 : index
      %c0_83 = arith.constant 0 : index
      %75 = vector.load %arg6[%c0_81, %c0_82, %c0_83] : memref<1x128x16xf32, #tpu.memory_space<vmem>>, vector<1x128x16xf32>
      %76 = vector.shape_cast %75 : vector<1x128x16xf32> to vector<128x16xf32>
      %77 = vector.shape_cast %74 : vector<128x16xf32> to vector<1x128x16xf32>
      tpu.vector_store %arg6[%c0_81, %c0_82, %c0_83], %77 {strides = array<i32>} : memref<1x128x16xf32, #tpu.memory_space<vmem>>, vector<1x128x16xf32>,
    } else {
    }
    return
  }
  func.func @transform_0(%arg0: i32, %arg1: i32, %arg2: i32) -> (i32, i32, i32, i32) {
    %c6_i32 = arith.constant 6 : i32
    %0 = arith.muli %arg0, %c6_i32 : i32
    %1 = arith.addi %0, %arg1 : i32
    %2 = arith.addi %1, %arg2 : i32
    %c0_i32 = arith.constant 0 : i32
    %c0_i32_0 = arith.constant 0 : i32
    %c0_i32_1 = arith.constant 0 : i32
    %c0_i32_2 = arith.constant 0 : i32
    return %2, %c0_i32, %c0_i32_0, %c0_i32_1 : i32, i32, i32, i32
  }
  func.func @transform_1(%arg0: i32, %arg1: i32, %arg2: i32) -> (i32, i32, i32, i32) {
    %c0_i32 = arith.constant 0 : i32
    %c0_i32_0 = arith.constant 0 : i32
    %c0_i32_1 = arith.constant 0 : i32
    %c0_i32_2 = arith.constant 0 : i32
    return %arg2, %c0_i32, %c0_i32_0, %c0_i32_1 : i32, i32, i32, i32
  }
  func.func @transform_2(%arg0: i32, %arg1: i32, %arg2: i32) -> (i32, i32) {
    %c0_i32 = arith.constant 0 : i32
    %c0_i32_0 = arith.constant 0 : i32
    %c0_i32_1 = arith.constant 0 : i32
    return %c0_i32, %c0_i32_0 : i32, i32
  }
  func.func @transform_3(%arg0: i32, %arg1: i32, %arg2: i32) -> (i32, i32, i32) {
    %c4_i32 = arith.constant 4 : i32
    %0 = arith.muli %arg0, %c4_i32 : i32
    %1 = arith.addi %0, %arg1 : i32
    %c0_i32 = arith.constant 0 : i32
    %c0_i32_0 = arith.constant 0 : i32
    %c0_i32_1 = arith.constant 0 : i32
    return %1, %c0_i32, %c0_i32_0 : i32, i32, i32
  }
}

</mosaic_0001>

<bundles_post_ra>
// kernel: tpu_custom_call.1
= control target key start
LH: loop header
LB: loop body
LE: loop exit
PB: predicated region body
PF: predicated region fallthrough
CT: control target
= control target key end

     0   :  { %s5448_s0 = inlined_call_operand.hbm [shape: bf16[6,10,18,16], index: 0, kind: input, shape index: {}]   ;;  %s5449_s1 = inlined_call_operand.hbm [shape: bf16[3,9,16,16], index: 1, kind: input, shape index: {}]   ;;  %s5450_s2 = inlined_call_operand.hbm [shape: f32[1,16], index: 2, kind: input, shape index: {}]   ;;  %s5451_s3 = inlined_call_operand.hbm [shape: f32[4,128,16], index: 3, kind: output, shape index: {}]  }
   0x1   :  { %5473 = sst [smem:[#allocation24_spill]] %s5448_s0 }
   0x2   :  { %5474 = sst [smem:[#allocation25_spill]] %s5450_s2 }
   0x3   :  { %5475 = sst [smem:[#allocation26_spill]] %s5451_s3 }
   0x4   :  { %8 = vsyncpa [#allocation4], 0 }
   0x5   :  { %10 = vsyncpa [#allocation4 + $0x1], 0 }
   0x6   :  { %11 = vsyncpa [#allocation7], 0 }
   0x7   :  { %13 = vsyncpa [#allocation7 + $0x1], 0 }
   0x8   :  { %14 = vsyncpa [#allocation5], 0 }
   0x9   :  { %16 = vsyncpa [#allocation5 + $0x1], 0  ;;  %s4178_s12 = smov 0   ;;  %s4180_s13 = smov 0  }
   0xa   :  { %s4182_s14 = smov 0   ;;  %s4184_s15 = smov 0  }
   0xb   :  { %s4186_s16 = smov 0   ;;  %s4188_s17 = smov 0  }
   0xc   :  { %s4190_s18 = smov 0   ;;  %s4192_s19 = smov 0  }
   0xd   :  { %s4194_s20 = smov 0   ;;  %s4196_s21 = smov 0  }
   0xe   :  { %s4198_s22 = smov 0   ;;  %s4200_s23 = smov 0  }
   0xf   :  { %s4202_s24 = smov 0   ;;  %s4204_s25 = smov 0  }
  0x10 LB: > { %5476 = sst [smem:[#allocation14_spill]] %s4095_s12  ;;  %s4245_s26 = sadd.s32 4294967295, %s4147_s25   ;;  %s4147_s25 = sphi %s4204_s25, %s22_s25   ;;  %s4143_s24 = sphi %s4202_s24, %s5547_s24   ;;  %s4139_s23 = sphi %s4200_s23, %s5546_s23   ;;  %s4135_s22 = sphi %s4198_s22, %s5545_s22   ;;  %s4131_s21 = sphi %s4196_s21, %s5544_s21   ;;  %s4127_s20 = sphi %s4194_s20, %s5543_s20   ;;  %s4123_s19 = sphi %s4192_s19, %s5542_s19   ;;  %s4119_s18 = sphi %s4190_s18, %s5541_s18   ;;  %s4115_s17 = sphi %s4188_s17, %s5540_s17   ;;  %s4111_s16 = sphi %s4186_s16, %s5539_s16   ;;  %s4107_s15 = sphi %s4184_s15, %s5533_s15   ;;  %s4103_s14 = sphi %s4182_s14, %s5538_s14   ;;  %s4099_s13 = sphi %s4180_s13, %s5537_s13   ;;  %s4095_s12 = sphi %s4178_s12, %s5536_s12  }
  0x11   : > { %5477 = sst [smem:[#allocation15_spill]] %s4099_s13  ;;  %s3038_s27 = sadd.s32 4294967294, %s4147_s25  }
  0x12   : > { %5478 = sst [smem:[#allocation16_spill]] %s4111_s16  ;;  %p5452_p0 = scmp.eq.s32.totalorder %s4147_s25, 0 }
  0x13   : > { %5479 = sst [smem:[#allocation17_spill]] %s4131_s21  ;;  %p67_p1 = scmp.ne.s32.totalorder %s4123_s19, %s4119_s18 }
  0x14   : > { %5480 = sst [smem:[#allocation18_spill]] %s4135_s22  ;;  %p5454_p2 = scmp.eq.s32.totalorder %s4245_s26, 0 }
  0x15   : > { %5481 = sst [smem:[#allocation19_spill]] %s4245_s26  ;;  %p87_p3 = scmp.ne.s32.totalorder %s4115_s17, %s4111_s16 }
  0x16   : > { %p93_p4 = scmp.ne.s32.totalorder %s4111_s16, %s4107_s15  ;;  %p4257_p5 = por %p5454_p2, %p67_p1 }
  0x17   : > { %p4264_p6 = por %p87_p3, %p5452_p0  ;;  %p141_p8 = scmp.ne.s32.totalorder %s4103_s14, %s4099_s13 }
  0x18   : > { %s5482_s29 = scalar_select %p4257_p5, 1, 0 }
  0x19   : > { %p4270_p7 = por %p93_p4, %p5454_p2  ;;  %p142_p9 = scmp.eq.s32.totalorder %s4245_s26, 11 }
  0x1a   : > { %p147_p10 = scmp.ne.s32.totalorder %s4099_s13, %s4095_s12  ;;  %p148_p11 = scmp.eq.s32.totalorder %s3038_s27, 11 }
  0x1b   : > { %s5484_s5 = scalar_select %p4270_p7, 1, 0 }
  0x1c   : > { %p4279_p12 = por %p142_p9, %p141_p8  ;;  %p3039_p13 = scmp.ge.s32.totalorder %s4147_s25, 1 }
  0x1d   : > { %5485 = sst [smem:[#allocation20_spill]] %s5484_s5  ;;  %p4284_p1 = por %p148_p11, %p147_p10 }
  0x1e   : > { %s5486_s6 = scalar_select %p4279_p12, 1, 0 }
  0x1f   : > { %s5488_s7 = scalar_select %p4284_p1, 1, 0 }
  0x20   : > { %5487 = sst [smem:[#allocation21_spill]] %s5486_s6  ;;  %p155_p3 = scmp.lt.s32.totalorder %s4147_s25, 13 }
  0x21   : > { %5489 = sst [smem:[#allocation22_spill]] %s5488_s7  ;;  %s4149_s9 = smov [#allocation8]  }
  0x22   : > { %p4289_p4 = pnand %p3039_p13, %p155_p3  ;;  %s168_s10 = sshll.u32 %s4149_s9, 4  ;;  %s169_s10 = int_to_ptr.vmem [resolvable:$true] %s168_s10 }
  0x23   : > { %p5456_p8 = scmp.lt.s32.totalorder %s4147_s25, 12  ;;  %s5493_s2 = sld [smem:[#allocation25_spill]] }
  0x24   : > { %s5490_s8 = scalar_select %p4289_p4, 1, 0 }
  0x25   : > { %p3734_p0 = pneg %p4289_p4  ;;  %p4306_p10 = pnand %p5456_p8, %p4264_p6 }
  0x27   : > { %p4298_p9 = pnand %p3734_p0, %p5454_p2 }
  0x28   : > { %s5492_s15 = scalar_select %p4306_p10, 1, 0 }
  0x29   : > { %s3905_s9 = scalar_lea.hbm %s5493_s2, 16  ;;  %p3907_p0 = pneg %p4298_p9 }
  0x2a   : > { %p3906_p11 = scmp.ne.s32.totalorder %s5493_s2, %s3905_s9  ;;  %p3912_p2 = scmp.lt.u32.totalorder %s3905_s9, %s5493_s2 }
  0x2c   : > { %p3908_p13 = pnand %p3907_p0, %p3906_p11 }
  0x2e   : > { %p3909_p3 = pneg %p3908_p13 }
  0x30   : > { %p3914_p6 = pnand %p3912_p2, %p3909_p3 }
  0x32   : > { %3917 = shalt.err (!%p3914_p6)
}
  0x33   : > { %s3918_s12 = scalar_lea.vmem %s169_s10, 16  ;;  %s3925_s18 = scalar_lea.vmem %s169_s10, 32 }
  0x34   : > { %p3919_p8 = scmp.ne.s32.totalorder %s169_s10, %s3918_s12  ;;  %p3926_p7 = scmp.lt.s32.totalorder %s169_s10, %s169_s10 }
  0x35   : > { %p3927_p5 = scmp.lt.s32.totalorder %s3925_s18, %s3918_s12 }
  0x36   : > { %p3921_p1 = pnand %p3919_p8, %p3907_p0 }
  0x37   : > { %p3928_p4 = por %p3927_p5, %p3926_p7 }
  0x38   : > { %p3922_p12 = pneg %p3921_p1 }
  0x3a   : > { %p3929_p10 = pnand %p3928_p4, %p3922_p12 }
  0x3c   : > { %3932 = shalt.err (!%p3929_p10)
}
  0x3d   : > { %3737 = dma.hbm_to_vmem [thread:$0]  (!%p4298_p9), %s5493_s2, 16, %s169_s10, [#allocation7]  }
  0x3e   : > { %s34_s12 = sadd.s32 1, %s4139_s23  ;;  %s37_s7 = sadd.s32 1, %s4143_s24 }
  0x3f   : > { %p35_p2 = scmp.ge.s32.totalorder %s34_s12, 3  ;;  %s47_s11 = sadd.s32 %s4139_s23, %s4143_s24 }
  0x40   : > { %s54_s27 = sadd.s32 1, %s4127_s20  ;;  %p61_p5 = scmp.ne.s32.totalorder %s4127_s20, %s4123_s19 }
  0x41   : > { %s5549_s12 = smov (%p35_p2, %s34_s12), 0  ;;  %s5551_s7 = smov (!%p35_p2, %s37_s7), %s4143_s24 }
  0x42   : > { %p5494_p7 = scmp.eq.s32.totalorder %s4147_s25, 0  ;;  %s77_s9 = ssub.s32 %s4139_s23, %s5549_s12 }
  0x43   : > { %p39_p1 = scmp.ge.s32.totalorder %s5551_s7, 4  ;;  %p78_p4 = scmp.eq.s32.totalorder %s77_s9, 0 }
  0x44   : > { %p4338_p12 = por %p5494_p7, %p61_p5  ;;  %s179_s4 = sand.u32 1, %s4127_s20  }
  0x45   : > { %s3719_s18 = smul.u32 1920, %s47_s11  ;;  %s5553_s7 = smov (%p39_p1, %s5551_s7), 0 }
  0x46   : > { %s5496_s28 = sadd.s32 1, %s4115_s17  ;;  %s50_s2 = sadd.s32 %s5553_s7, %s5549_s12 }
  0x47   : > { %s4350_s30 = scalar_select %p78_p4, %s4115_s17, %s5496_s28  }
  0x48   : > { %s128_s3 = ssub.s32 %s4143_s24, %s5553_s7  ;;  %s51_s6 = ssub.s32 %s47_s11, %s50_s2 }
  0x49   : > { %p129_p8 = scmp.eq.s32.totalorder %s128_s3, 0  ;;  %p52_p9 = scmp.eq.s32.totalorder %s51_s6, 0 }
  0x4a   : > { %s5497_s22 = sadd.s32 1, %s4103_s14  ;;  %s3718_s9 = smul.u32 120, %s179_s4 }
  0x4b   : > { %s4359_s21 = scalar_select %p129_p8, %s4103_s14, %s5497_s22  }
  0x4c   : > { %s4362_s13 = scalar_select %p52_p9, %s4127_s20, %s54_s27  }
  0x4d   : > { %s5498_s0 = sld [smem:[#allocation24_spill]]  ;;  %p5499_p10 = scmp.lt.s32.totalorder %s4147_s25, 12 }
  0x4e   : > { %s183_s3 = scalar_lea.vmem [#allocation3], %s3718_s9  ;;  %s4379_s6 = scalar_lea.sflag [#allocation4], %s179_s4 }
  0x4f   : > { %p4373_p11 = pnand %p5499_p10, %p4338_p12  ;;  %s193_s22 = sshll.u32 %s183_s3, 4  ;;  %s4377_s22 = int_to_ptr.vmem [resolvable:$true] %s193_s22 }
  0x51   : > { %p3935_p13 = pneg %p4373_p11 }
  0x53   : > { %s4367_s26 = scalar_lea.hbm %s5498_s0, %s3719_s18  ;;  %s3938_s27 = scalar_lea.hbm %s5498_s0, 11520 }
  0x54   : > { %s3933_s16 = scalar_lea.hbm %s4367_s26, 1920  ;;  %p3939_p2 = scmp.lt.u32.totalorder %s4367_s26, %s5498_s0 }
  0x55   : > { %p3934_p0 = scmp.ne.s32.totalorder %s4367_s26, %s3933_s16  ;;  %p3940_p5 = scmp.lt.u32.totalorder %s3938_s27, %s3933_s16 }
  0x56   : > { %p3942_p12 = scmp.lt.u32.totalorder %s3933_s16, %s4367_s26 }
  0x57   : > { %p3936_p3 = pnand %p3935_p13, %p3934_p0  ;;  %p3941_p7 = por %p3940_p5, %p3939_p2 }
  0x59   : > { %p3937_p6 = pneg %p3936_p3  ;;  %p3943_p1 = por %p3942_p12, %p3941_p7 }
  0x5b   : > { %p3944_p4 = pnand %p3943_p1, %p3937_p6 }
  0x5d   : > { %3947 = shalt.err (!%p3944_p4)
}
  0x5e   : > { %s3948_s4 = scalar_lea.vmem %s4377_s22, 1920  ;;  %s4150_s28 = smov [#allocation3]  }
  0x5f   : > { %p3949_p8 = scmp.ne.s32.totalorder %s4377_s22, %s3948_s4  ;;  %s3953_s9 = sshll.u32 %s4150_s28, 4  ;;  %s3954_s9 = int_to_ptr.vmem [resolvable:$false] %s3953_s9 }
  0x60   : > { %s3955_s3 = scalar_lea.vmem %s3954_s9, 3840  ;;  %p3956_p0 = scmp.lt.s32.totalorder %s4377_s22, %s3954_s9 }
  0x61   : > { %p3951_p9 = pnand %p3949_p8, %p3935_p13  ;;  %p3957_p3 = scmp.lt.s32.totalorder %s3955_s3, %s3948_s4 }
  0x63   : > { %p3952_p10 = pneg %p3951_p9  ;;  %p3958_p2 = por %p3957_p3, %p3956_p0 }
  0x65   : > { %p3959_p5 = pnand %p3958_p2, %p3952_p10 }
  0x67   : > { %3962 = shalt.err (!%p3959_p5)
}
  0x68   : > { %s4151_s16 = smov 64   ;;  %s4152_s5 = smov 4  }
  0x69   : > { %3741 = dma.hbm_to_vmem [thread:$0]  (!%p4373_p11), %s4367_s26, 1920, %s4377_s22, %s4379_s6, %s4151_s16, %s4151_s16, %s4152_s5  }
  0x6a   : > { %s203_s11 = sand.u32 1, %s4147_s25   ;;  %s205_s27 = sand.u32 1, %s4115_s17  }
  0x6b   : > { %s3720_s10 = smul.u32 72, %s205_s27  ;;  %s4420_s2 = scalar_lea.sflag [#allocation7], %s203_s11 }
  0x6c   : > { %s3721_s18 = smul.u32 1152, %s4139_s23  ;;  %p5501_p13 = scmp.ne.s32.totalorder %s5492_s15, 0 }
  0x6d   : > { %s207_s3 = scalar_lea.vmem [#allocation6], %s3720_s10  ;;  %s3968_s27 = scalar_lea.hbm %s5449_s1, 3456 }
  0x6e   : > { %s4416_s9 = scalar_lea.hbm %s5449_s1, %s3721_s18  ;;  %s214_s0 = sshll.u32 %s207_s3, 4  ;;  %s4418_s0 = int_to_ptr.vmem [resolvable:$true] %s214_s0 }
  0x6f   : > { %s3963_s26 = scalar_lea.hbm %s4416_s9, 1152  ;;  %p3965_p6 = pneg %p5501_p13 }
  0x70   : > { %p3964_p11 = scmp.ne.s32.totalorder %s4416_s9, %s3963_s26  ;;  %p3969_p1 = scmp.lt.u32.totalorder %s4416_s9, %s5449_s1 }
  0x71   : > { %p3970_p4 = scmp.lt.u32.totalorder %s3968_s27, %s3963_s26  ;;  %p3972_p9 = scmp.lt.u32.totalorder %s3963_s26, %s4416_s9 }
  0x72   : > { %p3966_p7 = pnand %p3965_p6, %p3964_p11 }
  0x73   : > { %p3971_p8 = por %p3970_p4, %p3969_p1 }
  0x74   : > { %p3967_p12 = pneg %p3966_p7 }
  0x75   : > { %p3973_p10 = por %p3972_p9, %p3971_p8 }
  0x77   : > { %p3974_p0 = pnand %p3973_p10, %p3967_p12 }
  0x79   : > { %3977 = shalt.err (!%p3974_p0)
}
  0x7a   : > { %s3978_s11 = scalar_lea.vmem %s4418_s0, 1152  ;;  %s4153_s10 = smov [#allocation6]  }
  0x7b   : > { %p3979_p3 = scmp.ne.s32.totalorder %s4418_s0, %s3978_s11  ;;  %s3983_s28 = sshll.u32 %s4153_s10, 4  ;;  %s3984_s28 = int_to_ptr.vmem [resolvable:$false] %s3983_s28 }
  0x7c   : > { %s3985_s3 = scalar_lea.vmem %s3984_s28, 2304  ;;  %p3986_p11 = scmp.lt.s32.totalorder %s4418_s0, %s3984_s28 }
  0x7d   : > { %p3981_p2 = pnand %p3979_p3, %p3965_p6  ;;  %p3987_p7 = scmp.lt.s32.totalorder %s3985_s3, %s3978_s11 }
  0x7f   : > { %p3982_p5 = pneg %p3981_p2  ;;  %p3988_p1 = por %p3987_p7, %p3986_p11 }
  0x81   : > { %p3989_p4 = pnand %p3988_p1, %p3982_p5 }
  0x83   : > { %3992 = shalt.err (!%p3989_p4)
}
  0x84   : > { %3744 = dma.hbm_to_vmem [thread:$0]  (!%p5501_p13), %s4416_s9, 1152, %s4418_s0, %s4420_s2, %s4151_s16, %s4151_s16, %s4152_s5  }
  0x85   : > { %p5502_p6 = scmp.ne.s32.totalorder %s5490_s8, 0 }
  0x87   : > { %226 = sbr.rel (%p5502_p6) target bundleno = 613 (0x265), region = 32 }
  0x8e   : > { %s228_s26 = sand.u32 1, %s4123_s19   ;;  %p5503_p12 = scmp.ne.s32.totalorder %s5482_s29, 0 }
  0x8f   : > { %s3722_s22 = smul.u32 120, %s228_s26  ;;  %s229_s6 = scalar_lea.sflag [#allocation4], %s228_s26 }
  0x91   : > { %s4454_s27 = scalar_lea.vmem [#allocation3], %s3722_s22 }
  0x92   : > { %4078 = dma.done.wait (%p5503_p12), %s229_s6, 1920  }
  0x93   : > { %4080 = vsyncadd (%p5503_p12), %s229_s6, 4294965376  ;;  %s5504_s15 = sld [smem:[#allocation19_spill]]  ;;  %s5505_s18 = sld [smem:[#allocation16_spill]] }
  0x94   : > { %s5506_s4 = sld [smem:[#allocation20_spill]] }
  0x99   : > { %s237_s11 = sand.u32 1, %s5504_s15   ;;  %s239_s0 = sand.u32 1, %s5505_s18  }
  0x9a   : > { %s3723_s16 = smul.u32 72, %s239_s0  ;;  %s238_s8 = scalar_lea.sflag [#allocation7], %s237_s11 }
  0x9b   : > { %p5507_p13 = scmp.ne.s32.totalorder %s5506_s4, 0 }
  0x9c   : > { %s4462_s5 = scalar_lea.vmem [#allocation6], %s3723_s16 }
  0x9d   : > { %4082 = dma.done.wait (%p5507_p13), %s238_s8, 1152  }
  0x9e   : > { %4084 = vsyncadd (%p5507_p13), %s238_s8, 4294966144  ;;  %p5508_p8 = scmp.eq.s32.totalorder %s5504_s15, 0 }
  0xa0   : > { %4086 = dma.done.wait (%p5508_p8), [#allocation7], 16   ;;  %p5509_p9 = pmov %p5508_p8 }
  0xa1   : > { %s5510_s29 = sld [smem:[#allocation15_spill]]  ;;  %s5511_s28 = sld [smem:[#allocation17_spill]] }
  0xa2   : > { %4088 = vsyncadd (%p5509_p9), [#allocation7], 4294967280 }
  0xa7   : > { %s270_s9 = sand.u32 1, %s5510_s29   ;;  %p3047_p10 = scmp.ne.s32.totalorder %s5511_s28, 0 }
  0xa8   : > { %s3046_s2 = sshll.u32 %s270_s9, 7  ;;  %vm283_vm0 = vcmask (!%p3047_p10), 130048   ;;  %v4154_v0 = vmov (!%p3047_p10), 0.0  }
  0xa9   : > { %s4475_s10 = scalar_lea.vmem [#allocation9], %s3046_s2  ;;  %282 = sbr.rel (%p3047_p10) target bundleno = 177 (0xb1), region = 48  ;;  %284 = vst.msk [vmem:[#allocation2] sm:$0xff] (!%p3047_p10), %vm283_vm0, %v4154_v0  ;;  %285 = vst.msk [vmem:[#allocation2 + $0x8] sm:$0xff] (!%p3047_p10), %vm283_vm0, %v4154_v0 }
  0xaa   : > { %286 = vst.msk [vmem:[#allocation2 + $0x10] sm:$0xff] (!%p3047_p10), %vm283_vm0, %v4154_v0  ;;  %287 = vst.msk [vmem:[#allocation2 + $0x18] sm:$0xff] (!%p3047_p10), %vm283_vm0, %v4154_v0 }
  0xab   : > { %288 = vst.msk [vmem:[#allocation2 + $0x20] sm:$0xff] (!%p3047_p10), %vm283_vm0, %v4154_v0  ;;  %289 = vst.msk [vmem:[#allocation2 + $0x28] sm:$0xff] (!%p3047_p10), %vm283_vm0, %v4154_v0 }
  0xac   : > { %290 = vst.msk [vmem:[#allocation2 + $0x30] sm:$0xff] (!%p3047_p10), %vm283_vm0, %v4154_v0  ;;  %291 = vst.msk [vmem:[#allocation2 + $0x38] sm:$0xff] (!%p3047_p10), %vm283_vm0, %v4154_v0 }
  0xad   : > { %292 = vst.msk [vmem:[#allocation2 + $0x40] sm:$0xff] (!%p3047_p10), %vm283_vm0, %v4154_v0  ;;  %293 = vst.msk [vmem:[#allocation2 + $0x48] sm:$0xff] (!%p3047_p10), %vm283_vm0, %v4154_v0 }
  0xae   : > { %294 = vst.msk [vmem:[#allocation2 + $0x50] sm:$0xff] (!%p3047_p10), %vm283_vm0, %v4154_v0  ;;  %295 = vst.msk [vmem:[#allocation2 + $0x58] sm:$0xff] (!%p3047_p10), %vm283_vm0, %v4154_v0 }
  0xaf   : > { %296 = vst.msk [vmem:[#allocation2 + $0x60] sm:$0xff] (!%p3047_p10), %vm283_vm0, %v4154_v0  ;;  %297 = vst.msk [vmem:[#allocation2 + $0x68] sm:$0xff] (!%p3047_p10), %vm283_vm0, %v4154_v0 }
  0xb0   : > { %298 = vst.msk [vmem:[#allocation2 + $0x70] sm:$0xff] %vm283_vm0, %v4154_v0  ;;  %299 = vst.msk [vmem:[#allocation2 + $0x78] sm:$0xff] %vm283_vm0, %v4154_v0 }
  0xb1 PF: > { %v3871_v1 = vld [vmem:[%s4462_s5 + $0x8] sm:$0xff]   ;;  %v3872_v2 = vld [vmem:[%s4462_s5 + $0x20] sm:$0xff]   ;;  %vm326_vm1 = vsmask.f32 3328  ;;  %vm327_vm2 = vsmask.f32 7440 }
  0xb2   : > { %3426 = vmatprep.subr.bf16.mxu1 %v3871_v1  ;;  %v4497_v3 = vld [vmem:[%s4454_s27] sm:$0xf]  ;;  %v4500_v4 = vld [vmem:[%s4454_s27 + $0x4] sm:$0xf]  ;;  %v4503_v5 = vld [vmem:[%s4454_s27 + $0x8] sm:$0x1]  ;;  %3498 = vmatprep.subr.bf16.mxu0 %v3872_v2 }
  0xb3   : > { %3427 = vmatpush3.bf16.msra.mxu1 %v3871_v1  ;;  %v330_v6 = vshrl.u32 %v4497_v3, 16  ;;  %v333_v7 = vshll.u32 %v4497_v3, 16  ;;  %3499 = vmatpush3.bf16.msra.mxu0 %v3872_v2  ;;  %v339_v8 = vshll.u32 %v4500_v4, 16  ;;  %v343_v9 = vshrl.u32 %v4500_v4, 16  ;;  %v4511_v13 = vld [vmem:[%s4462_s5] sm:$0xff]   ;;  %v4514_v14 = vld [vmem:[%s4462_s5 + $0x28] sm:$0xff]   ;;  %vm4527_vm3 = vmor %vm326_vm1, %vm327_vm2 }
  0xb4   : > { %v349_v10 = vshll.u32 %v4503_v5, 16  ;;  %v3146_v18 = vld [vmem:[%s4454_s27 + $0xc] sm:$0xf]  ;;  %3444 = vmatprep.subr.bf16.mxu1 %v4511_v13  ;;  %v4519_v20 = vld [vmem:[%s4454_s27 + $0x10] sm:$0xf]  ;;  %3516 = vmatprep.subr.bf16.mxu0 %v4514_v14  ;;  %vm554_vm4 = vcmask 130048  }
  0xb5   : > { %v332_v11 = vrot.slane %v330_v6, 4  ;;  %v335_v12 = vrot.slane %v333_v7, 5  ;;  %v341_v15 = vrot.slane %v339_v8, 5  ;;  %v345_v16 = vrot.slane %v343_v9, 4  ;;  %v4522_v21 = vld [vmem:[%s4454_s27 + $0x14] sm:$0x1] }
  0xb6   : > { %v351_v17 = vrot.slane %v349_v10, 5  ;;  %v1324_v22 = vshrl.u32 %v3146_v18, 16  ;;  %v1327_v23 = vshll.u32 %v3146_v18, 16  ;;  %v1333_v26 = vshll.u32 %v4519_v20, 16  ;;  %v4535_v35 = vld [vmem:[%s4454_s27 + $0xc] sm:$0xf] }
  0xb7   : > { %v336_v19 = vor.u32 %v335_v12, %v332_v11  ;;  %v346_v25 = vor.u32 %v345_v16, %v341_v15  ;;  %v1337_v27 = vshrl.u32 %v4519_v20, 16  ;;  %v1343_v28 = vshll.u32 %v4522_v21, 16  ;;  %v4540_v39 = vld [vmem:[%s4454_s27 + $0x10] sm:$0xf]  ;;  %v4543_v40 = vld [vmem:[%s4454_s27 + $0x14] sm:$0x1] }
  0xb8   : > { %v1326_v30 = vrot.slane %v1324_v22, 4  ;;  %v1329_v31 = vrot.slane %v1327_v23, 5  ;;  %v1335_v33 = vrot.slane %v1333_v26, 5  ;;  %v354_v41 = vshrl.u32 %v4535_v35, 16  ;;  %v3149_v50 = vld [vmem:[%s4454_s27 + $0x18] sm:$0xf] }
  0xb9   : > { %v337_v29 = vrot.slane %v336_v19, 4  ;;  %v347_v32 = vrot.slane %v346_v25, 4  ;;  %v1339_v34 = vrot.slane %v1337_v27, 4  ;;  %v1345_v38 = vrot.slane %v1343_v28, 5  ;;  %v4554_v55 = vld [vmem:[%s4454_s27 + $0x1c] sm:$0xf] }
  0xba   : > { %v1330_v37 = vor.u32 %v1329_v31, %v1326_v30  ;;  %v357_v44 = vshll.u32 %v4535_v35, 16  ;;  %v363_v45 = vshll.u32 %v4540_v39, 16  ;;  %v356_v48 = vrot.slane %v354_v41, 4  ;;  %v4562_v60 = vld [vmem:[%s4454_s27 + $0x20] sm:$0x1]  ;;  %s5522_s3 = sld [smem:[#allocation17_spill]] }
  0xbb   : > { %v342_v36 = vsel %vm4527_vm3, %v337_v29, %v341_v15  ;;  %v352_v42 = vsel %vm4527_vm3, %v347_v32, %v351_v17  ;;  %v1340_v43 = vor.u32 %v1339_v34, %v1335_v33  ;;  %v367_v49 = vshrl.u32 %v4540_v39, 16  ;;  %v4570_v12 = vld [vmem:[%s4454_s27 + $0x18] sm:$0xf]  ;;  %v4575_v19 = vld [vmem:[%s4454_s27 + $0x1c] sm:$0xf]  ;;  %v2790_v24 = vld [vmem:[#allocation2] sm:$0xff] }
  0xbc   : > { %v3050_v46 = vcombine.low %v342_v36, %v352_v42  ;;  %v1331_v47 = vrot.slane %v1330_v37, 4  ;;  %v359_v52 = vrot.slane %v357_v44, 5  ;;  %v365_v53 = vrot.slane %v363_v45, 5  ;;  %v4581_v27 = vld [vmem:[%s4454_s27 + $0x20] sm:$0x1] }
  0xbd   : > { %v1341_v51 = vrot.slane %v1340_v43, 4  ;;  %v373_v54 = vshll.u32 %v4543_v40, 16  ;;  %v1719_v57 = vrot.slane %v4519_v20, 5  ;;  %v1722_v58 = vrot.slane %v4522_v21, 5  ;;  %v3152_v32 = vld [vmem:[%s4454_s27 + $0x24] sm:$0xf] }
  0xbe   : > { %3428 = vmatprep.mubr.msk.bf16.mxu1 %vm554_vm4, %v3050_v46  ;;  %v1336_v56 = vsel %vm4527_vm3, %v1331_v47, %v1335_v33  ;;  %v369_v59 = vrot.slane %v367_v49, 4  ;;  %v360_v62 = vor.u32 %v359_v52, %v356_v48  ;;  %v1348_v0 = vshrl.u32 %v3149_v50, 16  ;;  %v4599_v45 = vld [vmem:[%s4454_s27 + $0x28] sm:$0xf]  ;;  %v4603_v49 = vld [vmem:[%s4454_s27 + $0x2c] sm:$0x1] }
  0xbf   : > { %v1346_v61 = vsel %vm4527_vm3, %v1341_v51, %v1345_v38  ;;  %v375_v63 = vrot.slane %v373_v54, 5  ;;  %v1351_v6 = vshll.u32 %v3149_v50, 16  ;;  %v1357_v7 = vshll.u32 %v4554_v55, 16  ;;  %v4594_v38 = vld [vmem:[%s4462_s5 + $0x10] sm:$0xff]  }
  0xc0   : > { %v3172_v1 = vcombine.low %v1336_v56, %v1346_v61  ;;  %v370_v2 = vor.u32 %v369_v59, %v365_v53  ;;  %v361_v8 = vrot.slane %v360_v62, 4  ;;  %v1350_v9 = vrot.slane %v1348_v0, 4  ;;  %v4609_v56 = vld [vmem:[%s4454_s27 + $0x24] sm:$0xf]  ;;  %p3337_p0 = scmp.ne.s32.totalorder %s5522_s3, 2 }
  0xc1   : > { %v1361_v10 = vshrl.u32 %v4554_v55, 16  ;;  %v1367_v11 = vshll.u32 %v4562_v60, 16  ;;  %v1353_v16 = vrot.slane %v1351_v6, 5  ;;  %v1359_v17 = vrot.slane %v1357_v7, 5  ;;  %v4617_v6 = vld [vmem:[%s4454_s27 + $0x28] sm:$0xf] }
  0xc2   : > { %3500 = vmatprep.mubr.msk.bf16.mxu0 %vm554_vm4, %v3172_v1  ;;  %v371_v15 = vrot.slane %v370_v2, 4  ;;  %v1726_v18 = vrot.slane %v4554_v55, 5  ;;  %v366_v22 = vsel %vm4527_vm3, %v361_v8, %v365_v53  ;;  %v1729_v26 = vrot.slane %v4562_v60, 5  ;;  %v4620_v7 = vld [vmem:[%s4462_s5 + $0x30] sm:$0xff]  }
  0xc3   : > { %v1363_v23 = vrot.slane %v1361_v10, 4  ;;  %v1369_v25 = vrot.slane %v1367_v11, 5  ;;  %v1354_v29 = vor.u32 %v1353_v16, %v1350_v9  ;;  %v378_v31 = vshrl.u32 %v4570_v12, 16 }
  0xc4   : > { %v376_v28 = vsel %vm4527_vm3, %v371_v15, %v375_v63  ;;  %v4587_v30 = vrot.slane %v1726_v18, 4  ;;  %v381_v36 = vshll.u32 %v4570_v12, 16  ;;  %v387_v37 = vshll.u32 %v4575_v19, 16 }
  0xc5   : > { %v3051_v33 = vcombine.low %v366_v22, %v376_v28  ;;  %v1364_v34 = vor.u32 %v1363_v23, %v1359_v17  ;;  %v1355_v41 = vrot.slane %v1354_v29, 4  ;;  %v380_v42 = vrot.slane %v378_v31, 4  ;;  %v4626_v22 = vld [vmem:[%s4454_s27 + $0x2c] sm:$0x1] }
  0xc6   : > { %v391_v43 = vshrl.u32 %v4575_v19, 16  ;;  %v397_v44 = vshll.u32 %v4581_v27, 16  ;;  %v383_v47 = vrot.slane %v381_v36, 5  ;;  %v389_v48 = vrot.slane %v387_v37, 5 }
  0xc7   : > { %3429 = vmatmul.mubr.msk.bf16.vlgmr.msra.gmra.mrb[0].mxu1 %vm554_vm4, %v3051_v33  ;;  %v1365_v46 = vrot.slane %v1364_v34, 4  ;;  %v1372_v50 = vshrl.u32 %v3152_v32, 16  ;;  %v1360_v51 = vsel %vm4527_vm3, %v1355_v41, %v1359_v17  ;;  %v1375_v54 = vshll.u32 %v3152_v32, 16  ;;  %v3155_v32 = vld [vmem:[%s4454_s27 + $0x30] sm:$0xf] }
  0xc8   : > { %3445 = vmatpush3.bf16.msra.mxu1 %v4511_v13  ;;  %v393_v52 = vrot.slane %v391_v43, 4  ;;  %v399_v53 = vrot.slane %v397_v44, 5  ;;  %v384_v61 = vor.u32 %v383_v47, %v380_v42  ;;  %v1381_v63 = vshll.u32 %v4599_v45, 16  ;;  %v4637_v41 = vld [vmem:[%s4454_s27 + $0x34] sm:$0xf] }
  0xc9   : > { %v1370_v59 = vsel %vm4527_vm3, %v1365_v46, %v1369_v25  ;;  %v1374_v62 = vrot.slane %v1372_v50, 4  ;;  %3462 = vmatprep.subr.bf16.mxu1 %v4594_v38  ;;  %v1377_v1 = vrot.slane %v1375_v54, 5  ;;  %v1385_v2 = vshrl.u32 %v4599_v45, 16  ;;  %v4645_v50 = vld [vmem:[%s4454_s27 + $0x38] sm:$0x1] }
  0xca   : > { %v3173_v13 = vcombine.low %v1360_v51, %v1370_v59  ;;  %v394_v0 = vor.u32 %v393_v52, %v389_v48  ;;  %v385_v8 = vrot.slane %v384_v61, 4  ;;  %v1383_v9 = vrot.slane %v1381_v63, 5  ;;  %v4650_v61 = vld [vmem:[%s4454_s27 + $0x30] sm:$0xf] }
  0xcb   : > { %v1391_v10 = vshll.u32 %v4603_v49, 16  ;;  %v402_v11 = vshrl.u32 %v4609_v56, 16  ;;  %v1378_v16 = vor.u32 %v1377_v1, %v1374_v62  ;;  %v1387_v17 = vrot.slane %v1385_v2, 4  ;;  %v4656_v1 = vld [vmem:[%s4454_s27 + $0x34] sm:$0xf] }
  0xcc   : > { %3501 = vmatmul.mubr.msk.bf16.vlgmr.msra.gmra.mrb[0].mxu0 %vm554_vm4, %v3173_v13  ;;  %v395_v15 = vrot.slane %v394_v0, 4  ;;  %v405_v23 = vshll.u32 %v4609_v56, 16  ;;  %v390_v25 = vsel %vm4527_vm3, %v385_v8, %v389_v48  ;;  %v411_v31 = vshll.u32 %v4617_v6, 16 }
  0xcd   : > { %3517 = vmatpush3.bf16.msra.mxu0 %v4514_v14  ;;  %v1393_v28 = vrot.slane %v1391_v10, 5  ;;  %v404_v29 = vrot.slane %v402_v11, 4  ;;  %vm867_vm5 = vcmask 1042432   ;;  %vm868_vm6 = vcmask 1046532  }
  0xce   : > { %v400_v33 = vsel %vm4527_vm3, %v395_v15, %v399_v53  ;;  %v1379_v34 = vrot.slane %v1378_v16, 4  ;;  %v1388_v36 = vor.u32 %v1387_v17, %v1383_v9  ;;  %v407_v37 = vrot.slane %v405_v23, 5  ;;  %3534 = vmatprep.subr.bf16.mxu0 %v4620_v7  ;;  %vm4678_vm7 = vmor %vm867_vm5, %vm868_vm6 }
  0xcf   : > { %v3052_v14 = vcombine.low %v390_v25, %v400_v33  ;;  %v413_v42 = vrot.slane %v411_v31, 5  ;;  %v415_v43 = vshrl.u32 %v4617_v6, 16  ;;  %v421_v44 = vshll.u32 %v4626_v22, 16 }
  0xd0   : > { %v1384_v46 = vsel %vm4527_vm3, %v1379_v34, %v1383_v9  ;;  %v1389_v47 = vrot.slane %v1388_v36, 4  ;;  %v408_v48 = vor.u32 %v407_v37, %v404_v29  ;;  %v1396_v51 = vshrl.u32 %v3155_v32, 16  ;;  %v3189_v37 = vld [vmem:[%s4454_s27 + $0xc] sm:$0xe] }
  0xd1   : > { %3432 = vmatprep.mubr.msk.bf16.mxu1 %vm554_vm4, %v3052_v14  ;;  %v417_v52 = vrot.slane %v415_v43, 4  ;;  %v423_v53 = vrot.slane %v421_v44, 5  ;;  %v1399_v54 = vshll.u32 %v3155_v32, 16  ;;  %v1405_v59 = vshll.u32 %v4637_v41, 16 }
  0xd2   : > { %v1394_v62 = vsel %vm4527_vm3, %v1389_v47, %v1393_v28  ;;  %v409_v63 = vrot.slane %v408_v48, 4  ;;  %v1398_v13 = vrot.slane %v1396_v51, 4  ;;  %v1409_v0 = vshrl.u32 %v4637_v41, 16  ;;  %v4664_v28 = vld [vmem:[%s4454_s27 + $0x38] sm:$0x1] }
  0xd3   : > { %v3174_v2 = vcombine.low %v1384_v46, %v1394_v62  ;;  %v418_v8 = vor.u32 %v417_v52, %v413_v42  ;;  %v1401_v9 = vrot.slane %v1399_v54, 5  ;;  %v1407_v10 = vrot.slane %v1405_v59, 5  ;;  %v4673_v46 = vld [vmem:[%s4454_s27 + $0x3c] sm:$0xf] }
  0xd4   : > { %v414_v11 = vsel %vm4527_vm3, %v409_v63, %v413_v42  ;;  %v1411_v15 = vrot.slane %v1409_v0, 4  ;;  %v1415_v16 = vshll.u32 %v4645_v50, 16  ;;  %v426_v17 = vshrl.u32 %v4650_v61, 16 }
  0xd5   : > { %3504 = vmatprep.mubr.msk.bf16.mxu0 %vm554_vm4, %v3174_v2  ;;  %v419_v23 = vrot.slane %v418_v8, 4  ;;  %v1402_v25 = vor.u32 %v1401_v9, %v1398_v13  ;;  %v429_v29 = vshll.u32 %v4650_v61, 16  ;;  %v435_v31 = vshll.u32 %v4656_v1, 16  ;;  %v4690_v8 = vld [vmem:[%s4454_s27 + $0x40] sm:$0xf] }
  0xd6   : > { %v1412_v32 = vor.u32 %v1411_v15, %v1407_v10  ;;  %v1417_v33 = vrot.slane %v1415_v16, 5  ;;  %v428_v34 = vrot.slane %v426_v17, 4  ;;  %v439_v36 = vshrl.u32 %v4656_v1, 16  ;;  %v4693_v9 = vld [vmem:[%s4454_s27 + $0x44] sm:$0x1] }
  0xd7   : > { %v424_v14 = vsel %vm4527_vm3, %v419_v23, %v423_v53  ;;  %v1403_v42 = vrot.slane %v1402_v25, 4  ;;  %v431_v43 = vrot.slane %v429_v29, 5  ;;  %v437_v44 = vrot.slane %v435_v31, 5  ;;  %v3190_v23 = vld [vmem:[%s4454_s27 + $0x18] sm:$0xe] }
  0xd8   : > { %v3053_v47 = vcombine.low %v414_v11, %v424_v14  ;;  %v1413_v48 = vrot.slane %v1412_v32, 4  ;;  %v441_v51 = vrot.slane %v439_v36, 4  ;;  %v445_v52 = vshll.u32 %v4664_v28, 16  ;;  %v4706_v25 = vld [vmem:[%s4454_s27 + $0x48] sm:$0xf] }
  0xd9   : > { %v1408_v53 = vsel %vm4527_vm3, %v1403_v42, %v1407_v10  ;;  %v432_v59 = vor.u32 %v431_v43, %v428_v34  ;;  %v3197_v62 = vrot.slane %v3189_v37, 9  ;;  %v1721_v63 = vrot.slane %v1719_v57, 4  ;;  %v4710_v34 = vld [vmem:[%s4454_s27 + $0x4c] sm:$0xf]  ;;  %v4719_v36 = vld [vmem:[%s4454_s27 + $0x50] sm:$0x1] }
  0xda   : > { %3433 = vmatmul.mubr.msk.bf16.gmra.mrb[4].mxu1 %vm554_vm4, %v3053_v47  ;;  %v1418_v13 = vsel %vm4527_vm3, %v1413_v48, %v1417_v33  ;;  %v442_v0 = vor.u32 %v441_v51, %v437_v44  ;;  %v447_v2 = vrot.slane %v445_v52, 5  ;;  %v450_v10 = vshrl.u32 %v4673_v46, 16 }
  0xdb   : > { %v3175_v11 = vcombine.low %v1408_v53, %v1418_v13  ;;  %v433_v15 = vrot.slane %v432_v59, 4  ;;  %v1720_v16 = vsel %vm4678_vm7, %v3197_v62, %v1719_v57  ;;  %v1723_v17 = vsel %vm4678_vm7, %v1721_v63, %v1722_v58  ;;  %v4737_v63 = vld [vmem:[%s4454_s27 + $0x54] sm:$0xf] }
  0xdc   : > { %v443_v29 = vrot.slane %v442_v0, 4  ;;  %v3207_v31 = vcombine.low %v1720_v16, %v1723_v17  ;;  %v452_v32 = vrot.slane %v450_v10, 4  ;;  %v453_v33 = vshll.u32 %v4673_v46, 16 }
  0xdd   : > { %3505 = vmatmul.mubr.msk.bf16.gmra.mrb[4].mxu0 %vm554_vm4, %v3175_v11  ;;  %v438_v20 = vsel %vm4527_vm3, %v433_v15, %v437_v44  ;;  %v459_v21 = vshll.u32 %v4690_v8, 16  ;;  %v463_v57 = vshrl.u32 %v4690_v8, 16  ;;  %v469_v58 = vshll.u32 %v4693_v9, 16  ;;  %v3191_v44 = vld [vmem:[%s4454_s27 + $0x24] sm:$0xe] }
  0xde   : > { %v448_v37 = vsel %vm4527_vm3, %v443_v29, %v447_v2  ;;  %3518 = vmatprep.mubr.msk.bf16.mxu0 %vm554_vm4, %v3207_v31  ;;  %v455_v14 = vrot.slane %v453_v33, 5  ;;  %v3198_v42 = vrot.slane %v3190_v23, 9  ;;  %v1730_v43 = vsel %vm4678_vm7, %v4587_v30, %v1729_v26  ;;  %v4743_v2 = vld [vmem:[%s4462_s5 + $0x38] sm:$0xff]  }
  0xdf   : > { %v3054_v47 = vcombine.low %v438_v20, %v448_v37  ;;  %v461_v48 = vrot.slane %v459_v21, 5  ;;  %v465_v51 = vrot.slane %v463_v57, 4  ;;  %v471_v52 = vrot.slane %v469_v58, 5  ;;  %v4747_v15 = vld [vmem:[%s4454_s27 + $0x58] sm:$0xf] }
  0xe0   : > { %v456_v53 = vor.u32 %v455_v14, %v452_v32  ;;  %v1727_v59 = vsel %vm4678_vm7, %v3198_v42, %v1726_v18  ;;  %v474_v62 = vshrl.u32 %v4706_v25, 16  ;;  %v477_v60 = vshll.u32 %v4706_v25, 16  ;;  %v4753_v21 = vld [vmem:[%s4454_s27 + $0x5c] sm:$0x1] }
  0xe1   : > { %3436 = vmatprep.mubr.msk.bf16.mxu1 %vm554_vm4, %v3054_v47  ;;  %v466_v26 = vor.u32 %v465_v51, %v461_v48  ;;  %v3208_v30 = vcombine.low %v1727_v59, %v1730_v43  ;;  %v483_v13 = vshll.u32 %v4710_v34, 16  ;;  %v487_v0 = vshrl.u32 %v4710_v34, 16  ;;  %v3192_v47 = vld [vmem:[%s4454_s27 + $0x30] sm:$0xe]  ;;  %v4767_v59 = vld [vmem:[%s4454_s27 + $0x40] sm:$0xf] }
  0xe2   : > { %v457_v55 = vrot.slane %v456_v53, 4  ;;  %v476_v10 = vrot.slane %v474_v62, 4  ;;  %v479_v18 = vrot.slane %v477_v60, 5  ;;  %v493_v11 = vshll.u32 %v4719_v36, 16 }
  0xe3   : > { %v467_v16 = vrot.slane %v466_v26, 4  ;;  %v485_v17 = vrot.slane %v483_v13, 5  ;;  %v489_v23 = vrot.slane %v487_v0, 4  ;;  %v3199_v29 = vrot.slane %v3191_v44, 9 }
  0xe4   : > { %v462_v31 = vsel %vm4527_vm3, %v457_v55, %v461_v48  ;;  %v480_v32 = vor.u32 %v479_v18, %v476_v10  ;;  %v495_v33 = vrot.slane %v493_v11, 5  ;;  %v1733_v20 = vrot.slane %v4599_v45, 5 }
  0xe5   : > { %v472_v57 = vsel %vm4527_vm3, %v467_v16, %v471_v52  ;;  %3519 = vmatmul.mubr.msk.bf16.vlgmr.msra.gmra.mrb[0].mxu0 %vm554_vm4, %v3208_v30  ;;  %v490_v58 = vor.u32 %v489_v23, %v485_v17  ;;  %v1736_v37 = vrot.slane %v4603_v49, 5  ;;  %v498_v14 = vshrl.u32 %v4737_v63, 16  ;;  %v4770_v49 = vld [vmem:[%s4454_s27 + $0x44] sm:$0x1]  ;;  %v3193_v30 = vld [vmem:[%s4454_s27 + $0x3c] sm:$0xe] }
  0xe6   : > { %v3055_v42 = vcombine.low %v462_v31, %v472_v57  ;;  %3535 = vmatpush3.bf16.msra.mxu0 %v4620_v7  ;;  %v481_v43 = vrot.slane %v480_v32, 4  ;;  %v1734_v45 = vsel %vm4678_vm7, %v3199_v29, %v1733_v20  ;;  %v1735_v44 = vrot.slane %v1733_v20, 4 }
  0xe7   : > { %v491_v48 = vrot.slane %v490_v58, 4  ;;  %v500_v51 = vrot.slane %v498_v14, 4  ;;  %v501_v52 = vshll.u32 %v4737_v63, 16  ;;  %v507_v53 = vshll.u32 %v4747_v15, 16  ;;  %3552 = vmatprep.subr.bf16.mxu0 %v4743_v2 }
  0xe8   : > { %3437 = vmatmul.mubr.msk.bf16.gmra.mrb[8].mxu1 %vm554_vm4, %v3055_v42  ;;  %v486_v7 = vsel %vm4527_vm3, %v481_v43, %v485_v17  ;;  %v1737_v62 = vsel %vm4678_vm7, %v1735_v44, %v1736_v37  ;;  %v511_v60 = vshrl.u32 %v4747_v15, 16  ;;  %v517_v26 = vshll.u32 %v4753_v21, 16  ;;  %v4794_v43 = vld [vmem:[%s4454_s27 + $0x4c] sm:$0xf] }
  0xe9   : > { %v496_v13 = vsel %vm4527_vm3, %v491_v48, %v495_v33  ;;  %v3209_v0 = vcombine.low %v1734_v45, %v1737_v62  ;;  %v503_v55 = vrot.slane %v501_v52, 5  ;;  %v509_v10 = vrot.slane %v507_v53, 5  ;;  %v3194_v45 = vld [vmem:[%s4454_s27 + $0x48] sm:$0xe]  ;;  %v4802_v48 = vld [vmem:[%s4454_s27 + $0x50] sm:$0x1] }
  0xea   : > { %v3056_v18 = vcombine.low %v486_v7, %v496_v13  ;;  %v513_v11 = vrot.slane %v511_v60, 4  ;;  %v3200_v16 = vrot.slane %v3192_v47, 9  ;;  %v1740_v23 = vrot.slane %v4637_v41, 5  ;;  %v4814_v60 = vld [vmem:[%s4454_s27 + $0x5c] sm:$0x1] }
  0xeb   : > { %3522 = vmatprep.mubr.msk.bf16.mxu0 %vm554_vm4, %v3209_v0  ;;  %v504_v17 = vor.u32 %v503_v55, %v500_v51  ;;  %v1743_v29 = vrot.slane %v4645_v50, 5  ;;  %v3201_v31 = vrot.slane %v3193_v30, 9  ;;  %v519_v33 = vrot.slane %v517_v26, 5  ;;  %v4805_v51 = vld [vmem:[%s4454_s27 + $0x58] sm:$0xf] }
  0xec   : > { %3440 = vmatprep.mubr.msk.bf16.mxu1 %vm554_vm4, %v3056_v18  ;;  %v514_v32 = vor.u32 %v513_v11, %v509_v10  ;;  %v1747_v20 = vrot.slane %v4767_v59, 5  ;;  %v1750_v57 = vrot.slane %v4770_v49, 5  ;;  %v1741_v37 = vsel %vm4678_vm7, %v3200_v16, %v1740_v23  ;;  %v3195_v26 = vld [vmem:[%s4454_s27 + $0x54] sm:$0xe]  ;;  %v4821_v18 = vld [vmem:[%s4454_s27 + $0x64] sm:$0xf] }
  0xed   : > { %v505_v58 = vrot.slane %v504_v17, 4  ;;  %v1742_v41 = vrot.slane %v1740_v23, 4  ;;  %v3067_v7 = vcombine.low %v4497_v3, %v4500_v4  ;;  %v3202_v0 = vrot.slane %v3194_v45, 9  ;;  %v4824_v11 = vld [vmem:[%s4454_s27 + $0x68] sm:$0x1] }
  0xee   : > { %v515_v14 = vrot.slane %v514_v32, 4  ;;  %v1748_v50 = vsel %vm4678_vm7, %v3201_v31, %v1747_v20  ;;  %v1749_v42 = vrot.slane %v1747_v20, 4  ;;  %v1754_v55 = vrot.slane %v4794_v43, 5  ;;  %5516 = vst [vmem:[#allocation23_spill] sm:$0xff] %v4824_v11  ;;  %v3196_v23 = vld [vmem:[%s4454_s27 + $0x60] sm:$0xe] }
  0xef   : > { %v510_v44 = vsel %vm4527_vm3, %v505_v58, %v509_v10  ;;  %v1744_v47 = vsel %vm4678_vm7, %v1742_v41, %v1743_v29  ;;  %v1757_v10 = vrot.slane %v4802_v48, 5  ;;  %v3203_v3 = vrot.slane %v3195_v26, 9 }
  0xf0   : > { %v520_v52 = vsel %vm4527_vm3, %v515_v14, %v519_v33  ;;  %v3210_v53 = vcombine.low %v1741_v37, %v1744_v47  ;;  %v1751_v62 = vsel %vm4678_vm7, %v1749_v42, %v1750_v57  ;;  %v1761_v16 = vrot.slane %v4805_v51, 5  ;;  %v845_v42 = vld [vmem:[%s4454_s27 + $0x18] sm:$0xe] }
  0xf1   : > { %v3057_v30 = vcombine.low %v510_v44, %v520_v52  ;;  %v3211_v13 = vcombine.low %v1748_v50, %v1751_v62  ;;  %v1764_v17 = vrot.slane %v4814_v60, 5  ;;  %v879_v29 = vrot.slane %v4540_v39, 5  ;;  %v844_v50 = vld [vmem:[%s4454_s27 + $0xc] sm:$0xe] }
  0xf2   : > { %3523 = vmatmul.mubr.msk.bf16.gmra.mrb[4].mxu0 %vm554_vm4, %v3210_v53  ;;  %v1755_v31 = vsel %vm4678_vm7, %v3202_v0, %v1754_v55  ;;  %v1756_v32 = vrot.slane %v1754_v55, 4  ;;  %v882_v33 = vrot.slane %v4543_v40, 5  ;;  %v1762_v20 = vsel %vm4678_vm7, %v3203_v3, %v1761_v16  ;;  %v4852_v62 = vld [vmem:[%s4462_s5 + $0x18] sm:$0xff]   ;;  %v847_v55 = vld [vmem:[%s4454_s27 + $0x30] sm:$0xe] }
  0xf3   : > { %3441 = vmatmul.mubr.msk.bf16.gmra.mrb[12].mxu1 %vm554_vm4, %v3057_v30  ;;  %3526 = vmatprep.mubr.msk.bf16.mxu0 %vm554_vm4, %v3211_v13  ;;  %v1763_v57 = vrot.slane %v1761_v16, 4  ;;  %v1768_v58 = vrot.slane %v4821_v18, 5  ;;  %v3204_v41 = vrot.slane %v3196_v23, 9  ;;  %v1771_v14 = vrot.slane %v4824_v11, 5  ;;  %v5132_v11 = vld [vmem:[%s4454_s27 + $0x68] sm:$0x1] }
  0xf4   : > { %3446 = vmatprep.mubr.msk.bf16.mxu1 %vm554_vm4, %v3067_v7  ;;  %v1758_v37 = vsel %vm4678_vm7, %v1756_v32, %v1757_v10  ;;  %v3068_v45 = vcombine.low %v4535_v35, %v4540_v39  ;;  %v3069_v52 = vcombine.low %v4570_v12, %v4575_v19  ;;  %v846_v7 = vld [vmem:[%s4454_s27 + $0x24] sm:$0xe]  ;;  %v3085_v26 = vrot.slane %v844_v50, 9 }
  0xf5   : > { %v3212_v40 = vcombine.low %v1755_v31, %v1758_v37  ;;  %v1765_v44 = vsel %vm4678_vm7, %v1763_v57, %v1764_v17  ;;  %v1770_v47 = vrot.slane %v1768_v58, 4  ;;  %v881_v30 = vrot.slane %v879_v29, 4 }
  0xf6   : > { %v3213_v53 = vcombine.low %v1762_v20, %v1765_v44  ;;  %v3086_v13 = vrot.slane %v845_v42, 9  ;;  %v1769_v35 = vsel %vm4678_vm7, %v3204_v41, %v1768_v58  ;;  %v886_v0 = vrot.slane %v4575_v19, 5  ;;  %v3882_v58 = vld [vmem:[%s4454_s27 + $0x18] sm:$0xff]  }
  0xf7   : > { %v1772_v39 = vsel %vm4678_vm7, %v1770_v47, %v1771_v14  ;;  %v4865_v12 = vsel %vm4678_vm7, %v3085_v26, %v879_v29  ;;  %v4869_v10 = vsel %vm4678_vm7, %v881_v30, %v882_v33  ;;  %v889_v3 = vrot.slane %v4581_v27, 5  ;;  %v848_v14 = vld [vmem:[%s4454_s27 + $0x3c] sm:$0xe]  ;;  %v3259_v47 = vld [vmem:[%s4454_s27 + $0x18] sm:$0xf] }
  0xf8   : > { %v3087_v16 = vrot.slane %v846_v7, 9  ;;  %v3095_v19 = vcombine.low %v4865_v12, %v4869_v10  ;;  %v4878_v17 = vsel %vm4678_vm7, %v3086_v13, %v886_v0  ;;  %v888_v23 = vrot.slane %v886_v0, 4  ;;  %v849_v30 = vld [vmem:[%s4454_s27 + $0x48] sm:$0xe] }
  0xf9   : > { %v893_v29 = vrot.slane %v4617_v6, 5  ;;  %v896_v27 = vrot.slane %v4626_v22, 5  ;;  %v3088_v31 = vrot.slane %v847_v55, 9  ;;  %v3214_v32 = vcombine.low %v1769_v35, %v1772_v39  ;;  %v3885_v13 = vld [vmem:[%s4454_s27 + $0x24] sm:$0xff]  }
  0xfa   : > { %3527 = vmatmul.mubr.msk.bf16.gmra.mrb[8].mxu0 %vm554_vm4, %v3212_v40  ;;  %v900_v33 = vrot.slane %v4656_v1, 5  ;;  %v903_v20 = vrot.slane %v4664_v28, 5  ;;  %v3070_v57 = vcombine.low %v4609_v56, %v4617_v6  ;;  %v3071_v50 = vcombine.low %v4650_v61, %v4656_v1 }
  0xfb   : > { %3447 = vmatmul.mubr.msk.bf16.vlgmr.msra.gmra.mrb[0].mxu1 %vm554_vm4, %v3068_v45  ;;  %3530 = vmatprep.mubr.msk.bf16.mxu0 %vm554_vm4, %v3213_v53  ;;  %v4896_v22 = vsel %vm4678_vm7, %v3087_v16, %v893_v29  ;;  %v895_v41 = vrot.slane %v893_v29, 4  ;;  %v872_v6 = vrot.slane %v4500_v4, 5  ;;  %v843_v45 = vld [vmem:[%s4454_s27] sm:$0xe]  ;;  %v3089_v40 = vrot.slane %v848_v14, 9  ;;  %v3887_v29 = vld [vmem:[%s4454_s27 + $0x30] sm:$0xff]  }
  0xfc   : > { %3463 = vmatpush3.bf16.msra.mxu1 %v4594_v38  ;;  %3450 = vmatprep.mubr.msk.bf16.mxu1 %vm554_vm4, %v3069_v52  ;;  %v4885_v38 = vsel %vm4678_vm7, %v888_v23, %v889_v3  ;;  %v4903_v28 = vsel %vm4678_vm7, %v3088_v31, %v900_v33  ;;  %v902_v56 = vrot.slane %v900_v33, 4  ;;  %v875_v44 = vrot.slane %v4503_v5, 5  ;;  %v4926_v52 = vld [vmem:[%s4454_s27 + $0x1c] sm:$0xf] }
  0xfd   : > { %3480 = vmatprep.subr.bf16.mxu1 %v4852_v62  ;;  %v3096_v37 = vcombine.low %v4878_v17, %v4885_v38  ;;  %v4908_v42 = vsel %vm4678_vm7, %v895_v41, %v896_v27  ;;  %v907_v53 = vrot.slane %v4690_v8, 5  ;;  %v910_v7 = vrot.slane %v4693_v9, 5  ;;  %v4944_v27 = vld [vmem:[%s4454_s27 + $0x20] sm:$0x1]  ;;  %v3262_v41 = vld [vmem:[%s4454_s27 + $0x24] sm:$0xf] }
  0xfe   : > { %v3097_v61 = vcombine.low %v4896_v22, %v4908_v42  ;;  %v4916_v1 = vsel %vm4678_vm7, %v902_v56, %v903_v20  ;;  %v3084_v26 = vrot.slane %v843_v45, 9  ;;  %v874_v5 = vrot.slane %v872_v6, 4  ;;  %v850_v45 = vld [vmem:[%s4454_s27 + $0x54] sm:$0xe] }
  0xff   : > { %v2171_v35 = vshrl.u32 %v3259_v47, 16  ;;  %v2174_v39 = vshll.u32 %v3259_v47, 16  ;;  %v4934_v0 = vsel %vm4678_vm7, %v3089_v40, %v907_v53  ;;  %v909_v55 = vrot.slane %v907_v53, 4  ;;  %v3265_v53 = vld [vmem:[%s4454_s27 + $0x30] sm:$0xf] }
 0x100   : > { %v3072_v3 = vcombine.low %v4673_v46, %v4690_v8  ;;  %v2180_v16 = vshll.u32 %v4926_v52, 16  ;;  %v2184_v9 = vshrl.u32 %v4926_v52, 16  ;;  %v3073_v23 = vcombine.low %v4706_v25, %v4710_v34  ;;  %v4953_v46 = vld [vmem:[%s4462_s5 + $0x40] sm:$0xff]  }
 0x101   : > { %v4948_v31 = vsel %vm4678_vm7, %v909_v55, %v910_v7  ;;  %v873_v33 = vsel %vm4678_vm7, %v3084_v26, %v872_v6  ;;  %v914_v20 = vrot.slane %v4710_v34, 5  ;;  %v876_v25 = vsel %vm4678_vm7, %v874_v5, %v875_v44  ;;  %v3889_v7 = vld [vmem:[%s4454_s27 + $0x3c] sm:$0xff]  }
 0x102   : > { %3531 = vmatmul.mubr.msk.bf16.gmra.mrb[12].mxu0 %vm554_vm4, %v3214_v32  ;;  %v3090_v32 = vrot.slane %v849_v30, 9  ;;  %v917_v14 = vrot.slane %v4719_v36, 5  ;;  %v2186_v34 = vrot.slane %v2184_v9, 4  ;;  %v4974_v36 = vld [vmem:[%s4454_s27 + $0x28] sm:$0xf]  ;;  %v3094_v40 = vcombine.low %v873_v33, %v876_v25 }
 0x103   : > { %3451 = vmatmul.mubr.msk.bf16.gmra.mrb[4].mxu1 %vm554_vm4, %v3070_v57  ;;  %3536 = vmatprep.mubr.msk.bf16.mxu0 %vm554_vm4, %v3882_v58  ;;  %v2173_v57 = vrot.slane %v2171_v35, 4  ;;  %v2176_v58 = vrot.slane %v2174_v39, 5  ;;  %v916_v6 = vrot.slane %v914_v20, 4  ;;  %v2190_v44 = vshll.u32 %v4944_v27, 16  ;;  %v4990_v35 = vld [vmem:[%s4454_s27 + $0x34] sm:$0xf] }
 0x104   : > { %3454 = vmatprep.mubr.msk.bf16.mxu1 %vm554_vm4, %v3071_v50  ;;  %v4965_v50 = vrot.slane %v2180_v16, 5  ;;  %v4969_v56 = vsel %vm4678_vm7, %v3090_v32, %v914_v20  ;;  %v2195_v5 = vshrl.u32 %v3262_v41, 16  ;;  %v2198_v30 = vshll.u32 %v3262_v41, 16 }
 0x105   : > { %v4983_v47 = vsel %vm4678_vm7, %v916_v6, %v917_v14  ;;  %v2177_v26 = vor.u32 %v2176_v58, %v2173_v57  ;;  %v2204_v55 = vshll.u32 %v4974_v36, 16  ;;  %v921_v16 = vrot.slane %v4747_v15, 5  ;;  %v3268_v58 = vld [vmem:[%s4454_s27 + $0x3c] sm:$0xf]  ;;  %v5013_v6 = vld [vmem:[%s4454_s27 + $0x40] sm:$0xf] }
 0x106   : > { %v2187_v39 = vor.u32 %v2186_v34, %v4965_v50  ;;  %v2208_v9 = vshrl.u32 %v4974_v36, 16  ;;  %v924_v32 = vrot.slane %v4753_v21, 5  ;;  %v2228_v33 = vshll.u32 %v4990_v35, 16 }
 0x107   : > { %v2232_v20 = vshrl.u32 %v4990_v35, 16  ;;  %v923_v57 = vrot.slane %v921_v16, 4  ;;  %v2178_v21 = vrot.slane %v2177_v26, 4  ;;  %v2197_v41 = vrot.slane %v2195_v5, 4  ;;  %v5022_v26 = vld [vmem:[%s4454_s27 + $0x2c] sm:$0x1] }
 0x108   : > { %v2200_v14 = vrot.slane %v2198_v30, 5 }
 0x109   : > { %v5010_v34 = vsel %vm4678_vm7, %v923_v57, %v924_v32  ;;  %v2246_v32 = vshll.u32 %v3268_v58, 16  ;;  %v2183_v57 = vsel %vm4527_vm3, %v2178_v21, %v4965_v50 }
 0x10a   : > { %3537 = vmatmul.mubr.msk.bf16.vlgmr.msra.gmra.mrb[0].mxu0 %vm554_vm4, %v3885_v13 }
 0x10b   : > { %3455 = vmatmul.mubr.msk.bf16.gmra.mrb[8].mxu1 %vm554_vm4, %v3072_v3  ;;  %3553 = vmatpush3.bf16.msra.mxu0 %v4743_v2  ;;  %v3074_v2 = vcombine.low %v4737_v63, %v4747_v15  ;;  %v3891_v63 = vld [vmem:[%s4454_s27 + $0x48] sm:$0xff]   ;;  %v3091_v3 = vrot.slane %v850_v45, 9  ;;  %v2192_v15 = vrot.slane %v2190_v44, 5  ;;  %v3892_v45 = vld [vmem:[%s4454_s27 + $0x54] sm:$0xff]   ;;  %v2188_v44 = vrot.slane %v2187_v39, 4 }
 0x10c   : > { %3458 = vmatprep.mubr.msk.bf16.mxu1 %vm554_vm4, %v3073_v23  ;;  %3540 = vmatprep.mubr.msk.bf16.mxu0 %vm554_vm4, %v3887_v29  ;;  %v2219_v23 = vshrl.u32 %v3265_v53, 16  ;;  %v2222_v29 = vshll.u32 %v3265_v53, 16  ;;  %v5017_v53 = vrot.slane %v2204_v55, 5  ;;  %v2252_v39 = vshll.u32 %v5013_v6, 16 }
 0x10d   : > { %3570 = vmatprep.subr.bf16.mxu0 %v4953_v46  ;;  %v5002_v25 = vsel %vm4678_vm7, %v3091_v3, %v921_v16  ;;  %v2234_v3 = vrot.slane %v2232_v20, 4  ;;  %v5027_v16 = vld [vmem:[%s4454_s27 + $0x38] sm:$0x1]  ;;  %v2256_v55 = vshrl.u32 %v5013_v6, 16  ;;  %v5039_v20 = vld [vmem:[%s4454_s27 + $0x4c] sm:$0xf] }
 0x10e   : > { %v2221_v5 = vrot.slane %v2219_v23, 4  ;;  %v2224_v30 = vrot.slane %v2222_v29, 5  ;;  %v2214_v29 = vshll.u32 %v5022_v26, 16  ;;  %v2238_v4 = vshll.u32 %v5027_v16, 16 }
 0x10f   : > { %v2248_v21 = vrot.slane %v2246_v32, 5 }
 0x110   : > { %v2225_v13 = vor.u32 %v2224_v30, %v2221_v5  ;;  %v2280_v5 = vshrl.u32 %v5039_v20, 16  ;;  %v3894_v30 = vld [vmem:[%s4454_s27 + $0x6c] sm:$0xff]   ;;  %v2240_v32 = vrot.slane %v2238_v4, 5 }
 0x112   : > { %3541 = vmatmul.mubr.msk.bf16.gmra.mrb[4].mxu0 %vm554_vm4, %v3889_v7  ;;  %v2201_v7 = vor.u32 %v2200_v14, %v2197_v41  ;;  %v5046_v41 = vrot.slane %v2252_v39, 5  ;;  %v2258_v14 = vrot.slane %v2256_v55, 4  ;;  %v5065_v39 = vld [vmem:[%s4462_s5 + $0x20] sm:$0xff]   ;;  %v2282_v4 = vrot.slane %v2280_v5, 4 }
 0x113   : > { %3459 = vmatmul.mubr.msk.bf16.gmra.mrb[12].mxu1 %vm554_vm4, %v3074_v2  ;;  %3544 = vmatprep.mubr.msk.bf16.mxu0 %vm554_vm4, %v3891_v63  ;;  %v2210_v2 = vrot.slane %v2208_v9, 4  ;;  %v5024_v63 = vrot.slane %v2228_v33, 5  ;;  %v3893_v9 = vld [vmem:[%s4454_s27 + $0x60] sm:$0xff]   ;;  %v3271_v33 = vld [vmem:[%s4454_s27 + $0x48] sm:$0xf] }
 0x114   : > { %3464 = vmatprep.mubr.msk.bf16.mxu1 %vm554_vm4, %v3094_v40  ;;  %v2243_v40 = vshrl.u32 %v3268_v58, 16  ;;  %v2193_v58 = vsel %vm4527_vm3, %v2188_v44, %v2192_v15  ;;  %v5054_v15 = vld [vmem:[%s4454_s27 + $0x44] sm:$0x1]  ;;  %v2267_v44 = vshrl.u32 %v3271_v33, 16  ;;  %v2202_v12 = vrot.slane %v2201_v7, 4 }
 0x115   : > { %v2211_v23 = vor.u32 %v2210_v2, %v5017_v53  ;;  %v2235_v8 = vor.u32 %v2234_v3, %v5024_v63  ;;  %v2270_v2 = vshll.u32 %v3271_v33, 16  ;;  %v3285_v3 = vcombine.low %v2183_v57, %v2193_v58  ;;  %v5072_v7 = vld [vmem:[%s4454_s27 + $0x58] sm:$0xf]  ;;  %v5084_v58 = vld [vmem:[%s4454_s27 + $0x50] sm:$0x1] }
 0x116   : > { %v2245_v50 = vrot.slane %v2243_v40, 4  ;;  %v2226_v40 = vrot.slane %v2225_v13, 4  ;;  %v2259_v17 = vor.u32 %v2258_v14, %v5046_v41  ;;  %v2262_v38 = vshll.u32 %v5054_v15, 16 }
 0x117   : > { %v2212_v10 = vrot.slane %v2211_v23, 4  ;;  %v2272_v57 = vrot.slane %v2270_v2, 5  ;;  %v1453_v23 = vshll.u32 %v4794_v43, 16  ;;  %v2304_v2 = vshrl.u32 %v5072_v7, 16 }
 0x118   : > { %v2249_v55 = vor.u32 %v2248_v21, %v2245_v50  ;;  %v3277_v50 = vld [vmem:[%s4454_s27 + $0x60] sm:$0xf] }
 0x11a   : > { %3545 = vmatmul.mubr.msk.bf16.gmra.mrb[8].mxu0 %vm554_vm4, %v3892_v45  ;;  %v2276_v45 = vshll.u32 %v5039_v20, 16  ;;  %v2250_v5 = vrot.slane %v2249_v55, 4 }
 0x11b   : > { %3465 = vmatmul.mubr.msk.bf16.vlgmr.msra.gmra.mrb[0].mxu1 %vm554_vm4, %v3095_v19  ;;  %3548 = vmatprep.mubr.msk.bf16.mxu0 %vm554_vm4, %v3893_v9  ;;  %v2216_v19 = vrot.slane %v2214_v29, 5  ;;  %v2269_v9 = vrot.slane %v2267_v44, 4  ;;  %v1457_v29 = vshrl.u32 %v4794_v43, 16  ;;  %v2300_v44 = vshll.u32 %v5072_v7, 16 }
 0x11c   : > { %3481 = vmatpush3.bf16.msra.mxu1 %v4852_v62  ;;  %3468 = vmatprep.mubr.msk.bf16.mxu1 %vm554_vm4, %v3096_v37  ;;  %v2236_v62 = vrot.slane %v2235_v8, 4  ;;  %v3274_v37 = vld [vmem:[%s4454_s27 + $0x54] sm:$0xf]  ;;  %v5074_v13 = vrot.slane %v2276_v45, 5  ;;  %v2207_v8 = vsel %vm4527_vm3, %v2202_v12, %v5017_v53  ;;  %v5090_v45 = vld [vmem:[%s4454_s27 + $0x64] sm:$0xf]  ;;  %v2231_v43 = vsel %vm4527_vm3, %v2226_v40, %v5024_v63 }
 0x11d   : > { %3588 = vmatprep.subr.bf16.mxu1 %v5065_v39  ;;  %v2217_v33 = vsel %vm4527_vm3, %v2212_v10, %v2216_v19  ;;  %v2291_v21 = vshrl.u32 %v3274_v37, 16  ;;  %v2294_v14 = vshll.u32 %v3274_v37, 16  ;;  %v2264_v12 = vrot.slane %v2262_v38, 5 }
 0x11e   : > { %v2241_v53 = vsel %vm4527_vm3, %v2236_v62, %v2240_v32  ;;  %v2260_v10 = vrot.slane %v2259_v17, 4  ;;  %v2273_v19 = vor.u32 %v2272_v57, %v2269_v9  ;;  %v2286_v63 = vshll.u32 %v5084_v58, 16 }
 0x11f   : > { %v5517_v40 = vcombine.low %v4903_v28, %v4916_v1  ;;  %v2315_v32 = vshrl.u32 %v3277_v50, 16  ;;  %v2318_v62 = vshll.u32 %v3277_v50, 16  ;;  %v2324_v22 = vshll.u32 %v5090_v45, 16  ;;  %v5116_v28 = vld [vmem:[%s4454_s27 + $0x5c] sm:$0x1] }
 0x120   : > { %v2328_v42 = vshrl.u32 %v5090_v45, 16  ;;  %v5111_v55 = vrot.slane %v2300_v44, 5  ;;  %v2306_v17 = vrot.slane %v2304_v2, 4  ;;  %v5113_v38 = vrot.slane %v1453_v23, 5  ;;  %v3280_v1 = vld [vmem:[%s4454_s27 + $0x6c] sm:$0xf] }
 0x121   : > { %v1459_v37 = vrot.slane %v1457_v29, 4  ;;  %v3286_v9 = vcombine.low %v2207_v8, %v2217_v33  ;;  %v3287_v57 = vcombine.low %v2231_v43, %v2241_v53  ;;  %v2274_v50 = vrot.slane %v2273_v19, 4 }
 0x122   : > { %3549 = vmatmul.mubr.msk.bf16.gmra.mrb[12].mxu0 %vm554_vm4, %v3894_v30  ;;  %v2283_v30 = vor.u32 %v2282_v4, %v5074_v13  ;;  %v2255_v4 = vsel %vm4527_vm3, %v2250_v5, %v5046_v41  ;;  %v2317_v44 = vrot.slane %v2315_v32, 4  ;;  %v2320_v2 = vrot.slane %v2318_v62, 5 }
 0x123   : > { %3469 = vmatmul.mubr.msk.bf16.gmra.mrb[4].mxu1 %vm554_vm4, %v3097_v61  ;;  %3554 = vmatprep.mubr.msk.bf16.mxu0 %vm554_vm4, %v3285_v3  ;;  %v2293_v61 = vrot.slane %v2291_v21, 4  ;;  %v2296_v3 = vrot.slane %v2294_v14, 5  ;;  %v2288_v21 = vrot.slane %v2286_v63, 5  ;;  %v5123_v14 = vld [vmem:[%s4454_s27 + $0x70] sm:$0xf]  ;;  %v5125_v23 = vrot.slane %v2324_v22, 5 }
 0x124   : > { %3472 = vmatprep.mubr.msk.bf16.mxu1 %vm554_vm4, %v5517_v40  ;;  %v2284_v40 = vrot.slane %v2283_v30, 4  ;;  %v2330_v29 = vrot.slane %v2328_v42, 4  ;;  %v2265_v8 = vsel %vm4527_vm3, %v2260_v10, %v2264_v12  ;;  %v2307_v43 = vor.u32 %v2306_v17, %v5111_v55 }
 0x125   : > { %v2297_v33 = vor.u32 %v2296_v3, %v2293_v61  ;;  %v2310_v53 = vshll.u32 %v5116_v28, 16  ;;  %v2339_v41 = vshrl.u32 %v3280_v1, 16  ;;  %v2342_v5 = vshll.u32 %v3280_v1, 16  ;;  %v5162_v1 = vld [vmem:[%s4454_s27 + $0x74] sm:$0x1] }
 0x126   : > { %v2348_v19 = vshll.u32 %v5123_v14, 16  ;;  %v2352_v30 = vshrl.u32 %v5123_v14, 16  ;;  %v1460_v63 = vor.u32 %v1459_v37, %v5113_v38  ;;  %v1463_v32 = vshll.u32 %v4802_v48, 16 }
 0x127   : > { %v5518_v12 = vcombine.low %v4934_v0, %v4948_v31  ;;  %v2279_v10 = vsel %vm4527_vm3, %v2274_v50, %v5074_v13  ;;  %v5519_v62 = vcombine.low %v4969_v56, %v4983_v47  ;;  %v2289_v48 = vsel %vm4527_vm3, %v2284_v40, %v2288_v21 }
 0x128   : > { %v2321_v0 = vor.u32 %v2320_v2, %v2317_v44  ;;  %v2331_v31 = vor.u32 %v2330_v29, %v5125_v23  ;;  %v3288_v22 = vcombine.low %v2255_v4, %v2265_v8  ;;  %v2298_v13 = vrot.slane %v2297_v33, 4  ;;  %v3161_v44 = vld [vmem:[%s4454_s27 + $0x48] sm:$0xf] }
 0x129   : > { %v2308_v42 = vrot.slane %v2307_v43, 4  ;;  %v2312_v61 = vrot.slane %v2310_v53, 5  ;;  %v2341_v56 = vrot.slane %v2339_v41, 4  ;;  %v2344_v47 = vrot.slane %v2342_v5, 5  ;;  %v3302_v41 = vld [vmem:[%s4454_s27 + $0x18] sm:$0xe] }
 0x12a   : > { %3555 = vmatmul.mubr.msk.bf16.vlgmr.msra.gmra.mrb[0].mxu0 %vm554_vm4, %v3286_v9  ;;  %v5156_v3 = vrot.slane %v2348_v19, 5  ;;  %v2354_v17 = vrot.slane %v2352_v30, 4  ;;  %v5158_v37 = vrot.slane %v1463_v32, 5  ;;  %v3896_v9 = vld [vmem:[%s4454_s27 + $0xc] sm:$0xff]   ;;  %v1461_v50 = vrot.slane %v1460_v63, 4 }
 0x12b   : > { %3473 = vmatmul.mubr.msk.bf16.gmra.mrb[8].mxu1 %vm554_vm4, %v5518_v12  ;;  %3571 = vmatpush3.bf16.msra.mxu0 %v4953_v46  ;;  %v2334_v46 = vshll.u32 %v5132_v11, 16  ;;  %v2322_v40 = vrot.slane %v2321_v0, 4  ;;  %v2332_v21 = vrot.slane %v2331_v31, 4  ;;  %v2303_v2 = vsel %vm4527_vm3, %v2298_v13, %v5111_v55  ;;  %v3158_v13 = vld [vmem:[%s4454_s27 + $0x3c] sm:$0xf] }
 0x12c   : > { %3476 = vmatprep.mubr.msk.bf16.mxu1 %vm554_vm4, %v5519_v62  ;;  %3558 = vmatprep.mubr.msk.bf16.mxu0 %vm554_vm4, %v3287_v57  ;;  %v3289_v57 = vcombine.low %v2279_v10, %v2289_v48  ;;  %v2313_v29 = vsel %vm4527_vm3, %v2308_v42, %v2312_v61  ;;  %v2566_v8 = vrot.slane %v4926_v52, 5  ;;  %v2345_v33 = vor.u32 %v2344_v47, %v2341_v56  ;;  %v3303_v47 = vld [vmem:[%s4454_s27 + $0x24] sm:$0xe] }
 0x12d   : > { %v2336_v4 = vrot.slane %v2334_v46, 5  ;;  %v2355_v43 = vor.u32 %v2354_v17, %v5156_v3  ;;  %v2358_v53 = vshll.u32 %v5162_v1, 16  ;;  %v5520_v5 = vcombine.low %v5002_v25, %v5010_v34  ;;  %v3897_v46 = vld [vmem:[%s4454_s27 + $0x18] sm:$0xff]  }
 0x12e   : > { %v1444_v55 = vshrl.u32 %v3161_v44, 16  ;;  %v1447_v19 = vshll.u32 %v3161_v44, 16  ;;  %v3290_v52 = vcombine.low %v2303_v2, %v2313_v29  ;;  %v2327_v30 = vsel %vm4527_vm3, %v2322_v40, %v5125_v23 }
 0x12f   : > { %v2337_v63 = vsel %vm4527_vm3, %v2332_v21, %v2336_v4  ;;  %v1466_v25 = vsel %vm4527_vm3, %v1461_v50, %v5158_v37  ;;  %v3310_v34 = vrot.slane %v3302_v41, 9  ;;  %v2568_v32 = vrot.slane %v2566_v8, 4 }
 0x130   : > { %v2569_v12 = vrot.slane %v4944_v27, 5  ;;  %v1446_v10 = vrot.slane %v1444_v55, 4  ;;  %v2346_v62 = vrot.slane %v2345_v33, 4  ;;  %v2356_v48 = vrot.slane %v2355_v43, 4 }
 0x131   : > { %v2360_v0 = vrot.slane %v2358_v53, 5  ;;  %v1449_v31 = vrot.slane %v1447_v19, 5  ;;  %v3291_v23 = vcombine.low %v2327_v30, %v2337_v63  ;;  %v2567_v61 = vsel %vm4678_vm7, %v3310_v34, %v2566_v8  ;;  %v3899_v53 = vld [vmem:[%s4454_s27 + $0x30] sm:$0xff]   ;;  %v3900_v19 = vld [vmem:[%s4454_s27 + $0x3c] sm:$0xff]  }
 0x132   : > { %3559 = vmatmul.mubr.msk.bf16.gmra.mrb[4].mxu0 %vm554_vm4, %v3288_v22  ;;  %v3898_v22 = vld [vmem:[%s4454_s27 + $0x24] sm:$0xff]   ;;  %v2570_v56 = vsel %vm4678_vm7, %v2568_v32, %v2569_v12  ;;  %v2573_v27 = vrot.slane %v4974_v36, 5  ;;  %v2351_v17 = vsel %vm4527_vm3, %v2346_v62, %v5156_v3  ;;  %v1420_v40 = vshrl.u32 %v3158_v13, 16  ;;  %v3305_v30 = vld [vmem:[%s4454_s27 + $0x3c] sm:$0xe] }
 0x133   : > { %3477 = vmatmul.mubr.msk.bf16.gmra.mrb[12].mxu1 %vm554_vm4, %v5520_v5  ;;  %3562 = vmatprep.mubr.msk.bf16.mxu0 %vm554_vm4, %v3289_v57  ;;  %v1450_v42 = vor.u32 %v1449_v31, %v1446_v10  ;;  %v2361_v37 = vsel %vm4527_vm3, %v2356_v48, %v2360_v0  ;;  %v2580_v57 = vrot.slane %v4990_v35, 5  ;;  %v1423_v36 = vshll.u32 %v3158_v13, 16  ;;  %v3164_v34 = vld [vmem:[%s4454_s27 + $0x54] sm:$0xf]  ;;  %v3306_v62 = vld [vmem:[%s4454_s27 + $0x48] sm:$0xe] }
 0x134   : > { %3482 = vmatprep.mubr.msk.bf16.mxu1 %vm554_vm4, %v3896_v9  ;;  %v3304_v9 = vld [vmem:[%s4454_s27 + $0x30] sm:$0xe]  ;;  %v1429_v21 = vshll.u32 %v4767_v59, 16  ;;  %v1433_v4 = vshrl.u32 %v4767_v59, 16  ;;  %v3311_v3 = vrot.slane %v3303_v47, 9  ;;  %v2575_v44 = vrot.slane %v2573_v27, 4 }
 0x135   : > { %v1451_v50 = vrot.slane %v1450_v42, 4  ;;  %v2576_v2 = vrot.slane %v5022_v26, 5  ;;  %v3312_v29 = vrot.slane %v3304_v9, 9  ;;  %v3292_v33 = vcombine.low %v2351_v17, %v2361_v37  ;;  %v3901_v47 = vld [vmem:[%s4454_s27 + $0x48] sm:$0xff]   ;;  %v3902_v9 = vld [vmem:[%s4454_s27 + $0x54] sm:$0xff]  }
 0x136   : > { %v3320_v43 = vcombine.low %v2567_v61, %v2570_v56  ;;  %v2582_v59 = vrot.slane %v2580_v57, 4  ;;  %v1422_v41 = vrot.slane %v1420_v40, 4  ;;  %v1425_v5 = vrot.slane %v1423_v36, 5  ;;  %v3167_v36 = vld [vmem:[%s4454_s27 + $0x60] sm:$0xf] }
 0x137   : > { %v1456_v35 = vsel %vm4527_vm3, %v1451_v50, %v5113_v38  ;;  %v5221_v55 = vrot.slane %v1429_v21, 5  ;;  %v1435_v38 = vrot.slane %v1433_v4, 4  ;;  %v2574_v26 = vsel %vm4678_vm7, %v3311_v3, %v2573_v27 }
 0x138   : > { %v5217_v8 = vcombine.low %v1456_v35, %v1466_v25  ;;  %v2587_v63 = vrot.slane %v5013_v6, 5  ;;  %v1439_v25 = vshll.u32 %v4770_v49, 16  ;;  %v1426_v12 = vor.u32 %v1425_v5, %v1422_v41 }
 0x139   : > { %v1436_v10 = vor.u32 %v1435_v38, %v5221_v55  ;;  %v2594_v48 = vrot.slane %v5039_v20, 5  ;;  %v3313_v49 = vrot.slane %v3305_v30, 9  ;;  %v2590_v0 = vrot.slane %v5054_v15, 5 }
 0x13a   : > { %3563 = vmatmul.mubr.msk.bf16.gmra.mrb[8].mxu0 %vm554_vm4, %v3290_v52  ;;  %v2577_v52 = vsel %vm4678_vm7, %v2575_v44, %v2576_v2  ;;  %v1468_v31 = vshrl.u32 %v3164_v34, 16  ;;  %v2589_v42 = vrot.slane %v2587_v63, 4  ;;  %v1441_v61 = vrot.slane %v1439_v25, 5  ;;  %v3307_v2 = vld [vmem:[%s4454_s27 + $0x54] sm:$0xe] }
 0x13b   : > { %3483 = vmatmul.mubr.msk.bf16.vlgmr.msra.gmra.mrb[0].mxu1 %vm554_vm4, %v3897_v46  ;;  %3566 = vmatprep.mubr.msk.bf16.mxu0 %vm554_vm4, %v3291_v23  ;;  %v3321_v6 = vcombine.low %v2574_v26, %v2577_v52  ;;  %v1471_v46 = vshll.u32 %v3164_v34, 16  ;;  %v1477_v23 = vshll.u32 %v4805_v51, 16  ;;  %v3314_v56 = vrot.slane %v3306_v62, 9 }
 0x13c   : > { %3589 = vmatpush3.bf16.msra.mxu1 %v5065_v39  ;;  %3486 = vmatprep.mubr.msk.bf16.mxu1 %vm554_vm4, %v3898_v22  ;;  %v2583_v39 = vrot.slane %v5027_v16, 5  ;;  %v2581_v16 = vsel %vm4678_vm7, %v3312_v29, %v2580_v57  ;;  %v1481_v22 = vshrl.u32 %v4805_v51, 16  ;;  %v1427_v20 = vrot.slane %v1426_v12, 4 }
 0x13d   : > { %v1437_v27 = vrot.slane %v1436_v10, 4  ;;  %v2596_v17 = vrot.slane %v2594_v48, 4  ;;  %v2597_v37 = vrot.slane %v5084_v58, 5  ;;  %v1470_v15 = vrot.slane %v1468_v31, 4 }
 0x13e   : > { %v2584_v32 = vsel %vm4678_vm7, %v2582_v59, %v2583_v39  ;;  %v1473_v57 = vrot.slane %v1471_v46, 5  ;;  %v1479_v50 = vrot.slane %v1477_v23, 5  ;;  %v1483_v40 = vrot.slane %v1481_v22, 4  ;;  %v5521_v46 = vld [vmem:[#allocation23_spill] sm:$0xff] }
 0x13f   : > { %v3322_v13 = vcombine.low %v2581_v16, %v2584_v32  ;;  %v2588_v51 = vsel %vm4678_vm7, %v3313_v49, %v2587_v63  ;;  %v2591_v21 = vsel %vm4678_vm7, %v2589_v42, %v2590_v0  ;;  %v2595_v4 = vsel %vm4678_vm7, %v3314_v56, %v2594_v48  ;;  %v3309_v22 = vld [vmem:[%s4454_s27 + $0x6c] sm:$0xe] }
 0x140   : > { %v2601_v58 = vrot.slane %v5072_v7, 5  ;;  %v1432_v3 = vsel %vm4527_vm3, %v1427_v20, %v5221_v55  ;;  %v1442_v35 = vsel %vm4527_vm3, %v1437_v27, %v1441_v61  ;;  %v2598_v44 = vsel %vm4678_vm7, %v2596_v17, %v2597_v37  ;;  %v3308_v7 = vld [vmem:[%s4454_s27 + $0x60] sm:$0xe] }
 0x141   : > { %v2608_v29 = vrot.slane %v5090_v45, 5  ;;  %v1501_v59 = vshll.u32 %v4821_v18, 16  ;;  %v1505_v39 = vshrl.u32 %v4821_v18, 16  ;;  %v1474_v41 = vor.u32 %v1473_v57, %v1470_v15  ;;  %v3903_v45 = vld [vmem:[%s4454_s27 + $0x60] sm:$0xff]  }
 0x142   : > { %3567 = vmatmul.mubr.msk.bf16.gmra.mrb[12].mxu0 %vm554_vm4, %v3292_v33  ;;  %v1492_v33 = vshrl.u32 %v3167_v36, 16  ;;  %v1484_v5 = vor.u32 %v1483_v40, %v1479_v50  ;;  %v1487_v55 = vshll.u32 %v4814_v60, 16  ;;  %v3324_v38 = vcombine.low %v2595_v4, %v2598_v44 }
 0x143   : > { %3487 = vmatmul.mubr.msk.bf16.gmra.mrb[4].mxu1 %vm554_vm4, %v3899_v53  ;;  %3572 = vmatprep.mubr.msk.bf16.mxu0 %vm554_vm4, %v3320_v43  ;;  %v1495_v43 = vshll.u32 %v3167_v36, 16  ;;  %v3323_v53 = vcombine.low %v2588_v51, %v2591_v21  ;;  %v2603_v26 = vrot.slane %v2601_v58, 4  ;;  %v2604_v52 = vrot.slane %v5116_v28, 5 }
 0x144   : > { %3490 = vmatprep.mubr.msk.bf16.mxu1 %vm554_vm4, %v3900_v19  ;;  %v3315_v19 = vrot.slane %v3307_v2, 9  ;;  %v3176_v30 = vcombine.low %v1432_v3, %v1442_v35  ;;  %v3316_v16 = vrot.slane %v3308_v7, 9  ;;  %v2610_v63 = vrot.slane %v2608_v29, 4  ;;  %v2792_v2 = vld [vmem:[#allocation2 + $0x10] sm:$0xff] }
 0x145   : > { %v2611_v25 = vrot.slane %v5132_v11, 5  ;;  %v1494_v34 = vrot.slane %v1492_v33, 4  ;;  %v1497_v32 = vrot.slane %v1495_v43, 5  ;;  %v1503_v12 = vrot.slane %v1501_v59, 5  ;;  %v2793_v59 = vld [vmem:[#allocation2 + $0x18] sm:$0xff] }
 0x146   : > { %v1507_v18 = vrot.slane %v1505_v39, 4  ;;  %v1475_v10 = vrot.slane %v1474_v41, 4  ;;  %v1485_v62 = vrot.slane %v1484_v5, 4  ;;  %v1489_v48 = vrot.slane %v1487_v55, 5  ;;  %v2791_v5 = vld [vmem:[#allocation2 + $0x8] sm:$0xff] }
 0x147   : > { %v2602_v60 = vsel %vm4678_vm7, %v3315_v19, %v2601_v58  ;;  %v2605_v11 = vsel %vm4678_vm7, %v2603_v26, %v2604_v52  ;;  %v2609_v28 = vsel %vm4678_vm7, %v3316_v16, %v2608_v29  ;;  %v2612_v49 = vsel %vm4678_vm7, %v2610_v63, %v2611_v25  ;;  %v2794_v63 = vld [vmem:[#allocation2 + $0x20] sm:$0xff] }
 0x148   : > { %v1498_v0 = vor.u32 %v1497_v32, %v1494_v34  ;;  %v1508_v31 = vor.u32 %v1507_v18, %v1503_v12  ;;  %v1511_v23 = vshll.u32 %v5521_v46, 16  ;;  %v1490_v42 = vsel %vm4527_vm3, %v1485_v62, %v1489_v48  ;;  %v2797_v32 = vld [vmem:[#allocation2 + $0x38] sm:$0xff]  ;;  %v2795_v62 = vld [vmem:[#allocation2 + $0x28] sm:$0xff] }
 0x149   : > { %v3325_v61 = vcombine.low %v2602_v60, %v2605_v11  ;;  %v3326_v56 = vcombine.low %v2609_v28, %v2612_v49  ;;  %v2618_v20 = vrot.slane %v5162_v1, 5 }
 0x14a   : > { %3573 = vmatmul.mubr.msk.bf16.vlgmr.msra.gmra.mrb[0].mxu0 %vm554_vm4, %v3321_v6  ;;  %v2615_v6 = vrot.slane %v5123_v14, 5  ;;  %v1499_v17 = vrot.slane %v1498_v0, 4  ;;  %v1509_v37 = vrot.slane %v1508_v31, 4  ;;  %v2800_v0 = vld [vmem:[#allocation2 + $0x50] sm:$0xff] }
 0x14b   : > { %3491 = vmatmul.mubr.msk.bf16.gmra.mrb[8].mxu1 %vm554_vm4, %v3901_v47  ;;  %3576 = vmatprep.mubr.msk.bf16.mxu0 %vm554_vm4, %v3322_v13  ;;  %v1480_v13 = vsel %vm4527_vm3, %v1475_v10, %v1479_v50  ;;  %v3317_v47 = vrot.slane %v3309_v22, 9  ;;  %v2798_v22 = vld [vmem:[#allocation2 + $0x40] sm:$0xff] }
 0x14c   : > { %3494 = vmatprep.mubr.msk.bf16.mxu1 %vm554_vm4, %v3902_v9  ;;  %v2617_v14 = vrot.slane %v2615_v6, 4  ;;  %v3178_v27 = vcombine.low %v1480_v13, %v1490_v42  ;;  %v1513_v9 = vrot.slane %v1511_v23, 5  ;;  %v1504_v1 = vsel %vm4527_vm3, %v1499_v17, %v1503_v12  ;;  %v2799_v17 = vld [vmem:[#allocation2 + $0x48] sm:$0xff] }
 0x14d   : > { %v2616_v15 = vsel %vm4678_vm7, %v3317_v47, %v2615_v6 }
 0x14e   : > { %v2619_v57 = vsel %vm4678_vm7, %v2617_v14, %v2618_v20  ;;  %v1514_v50 = vsel %vm4527_vm3, %v1509_v37, %v1513_v9 }
 0x14f   : > { %v3327_v40 = vcombine.low %v2616_v15, %v2619_v57  ;;  %v3179_v36 = vcombine.low %v1504_v1, %v1514_v50 }
 0x152   : > { %3577 = vmatmul.mubr.msk.bf16.gmra.mrb[4].mxu0 %vm554_vm4, %v3323_v53 }
 0x153   : > { %3495 = vmatmul.mubr.msk.bf16.gmra.mrb[12].mxu1 %vm554_vm4, %v3903_v45  ;;  %3580 = vmatprep.mubr.msk.bf16.mxu0 %vm554_vm4, %v3324_v38  ;;  %v2796_v45 = vld [vmem:[#allocation2 + $0x30] sm:$0xff] }
 0x154   : > { %3508 = vmatprep.mubr.msk.bf16.mxu1 %vm554_vm4, %v3176_v30 }
 0x15a   : > { %3581 = vmatmul.mubr.msk.bf16.gmra.mrb[8].mxu0 %vm554_vm4, %v3325_v61 }
 0x15b   : > { %3509 = vmatmul.mubr.msk.bf16.vlgmr.msra.gmra.mrb[8].mxu1 %vm554_vm4, %v5217_v8  ;;  %3584 = vmatprep.mubr.msk.bf16.mxu0 %vm554_vm4, %v3326_v56  ;;  %v2801_v56 = vld [vmem:[#allocation2 + $0x58] sm:$0xff] }
 0x15c   : > { %3512 = vmatprep.mubr.msk.bf16.mxu1 %vm554_vm4, %v3178_v27 }
 0x162   : > { %3585 = vmatmul.mubr.msk.bf16.gmra.mrb[12].mxu0 %vm554_vm4, %v3327_v40  ;;  %v2804_v40 = vld [vmem:[#allocation2 + $0x70] sm:$0xff] }
 0x163   : > { %3513 = vmatmul.mubr.msk.bf16.gmra.mrb[12].mxu1 %vm554_vm4, %v3179_v36 }
 0x20e   : > { %v3484_v8 = vpop.f32.mrb[0].mxu1 }
 0x20f   : > { %v1220_v51 = vpop.f32.mrb[1].mxu1 }
 0x210   : > { %v3485_v21 = vpop.f32.mrb[2].mxu1 }
 0x211   : > { %v1223_v4 = vpop.f32.mrb[3].mxu1 }
 0x216   : > { %v3488_v54 = vpop.f32.mrb[4].mxu1 }
 0x217   : > { %v1236_v58 = vpop.f32.mrb[5].mxu1 }
 0x218   : > { %v3489_v3 = vpop.f32.mrb[6].mxu1 }
 0x219   : > { %v1239_v35 = vpop.f32.mrb[7].mxu1 }
 0x21d   : > { %v3574_v44 = vpop.f32.mrb[0].mxu0 }
 0x21e   : > { %v3590_v29 = vadd.f32 %v3574_v44, %v3484_v8  ;;  %v2711_v7 = vpop.f32.mrb[1].mxu0 }
 0x21f   : > { %v3591_v33 = vadd.f32 %v2711_v7, %v1220_v51  ;;  %v3575_v43 = vpop.f32.mrb[2].mxu0  ;;  %v2803_v7 = vld [vmem:[#allocation2 + $0x68] sm:$0xff] }
 0x220   : > { %v2808_v39 = vadd.f32 %v3590_v29, %v2792_v2  ;;  %v3592_v53 = vadd.f32 %v3575_v43, %v3485_v21  ;;  %v2714_v41 = vpop.f32.mrb[3].mxu0  ;;  %v2802_v21 = vld [vmem:[#allocation2 + $0x60] sm:$0xff] }
 0x221   : > { %v2806_v55 = vadd.f32 %v3591_v33, %v2790_v24  ;;  %v3593_v38 = vadd.f32 %v2714_v41, %v1223_v4 }
 0x222   : > { %2824 = vst.msk [vmem:[#allocation2 + $0x10] sm:$0xff] %vm554_vm4, %v2808_v39  ;;  %v2809_v19 = vadd.f32 %v3592_v53, %v2793_v59  ;;  %v3338_v53 = vld [vmem:[#allocation8] ss:$0 sm:$0xff] (!%p3337_p0) }
 0x223   : > { %2822 = vst.msk [vmem:[#allocation2] sm:$0xff] %vm554_vm4, %v2806_v55  ;;  %v2807_v26 = vadd.f32 %v3593_v38, %v2791_v5 }
 0x224   : > { %2825 = vst.msk [vmem:[#allocation2 + $0x18] sm:$0xff] %vm554_vm4, %v2809_v19 }
 0x225   : > { %2823 = vst.msk [vmem:[#allocation2 + $0x8] sm:$0xff] %vm554_vm4, %v2807_v26  ;;  %v3578_v52 = vpop.f32.mrb[4].mxu0 }
 0x226   : > { %v3594_v30 = vadd.f32 %v3578_v52, %v3488_v54  ;;  %v2727_v16 = vpop.f32.mrb[5].mxu0 }
 0x227   : > { %v3595_v25 = vadd.f32 %v2727_v16, %v1236_v58  ;;  %v3579_v34 = vpop.f32.mrb[6].mxu0 }
 0x228   : > { %v2812_v12 = vadd.f32 %v3594_v30, %v2796_v45  ;;  %v3596_v18 = vadd.f32 %v3579_v34, %v3489_v3  ;;  %v2730_v10 = vpop.f32.mrb[7].mxu0  ;;  %v2805_v3 = vld [vmem:[#allocation2 + $0x78] sm:$0xff] }
 0x229   : > { %v2810_v48 = vadd.f32 %v3595_v25, %v2794_v63  ;;  %v3597_v60 = vadd.f32 %v2730_v10, %v1239_v35  ;;  %v2844_v38 = vld [vmem:[#allocation2 + $0x10] sm:$0xff] (!%p3337_p0) }
 0x22a   : > { %2828 = vst.msk [vmem:[#allocation2 + $0x30] sm:$0xff] %vm554_vm4, %v2812_v12  ;;  %v2813_v11 = vadd.f32 %v3596_v18, %v2797_v32  ;;  %v2842_v39 = vld [vmem:[#allocation2] sm:$0xff] (!%p3337_p0)  ;;  %v2867_v52 = vadd.f32 (!%p3337_p0), %v3338_v53, %v2844_v38 }
 0x22b   : > { %2826 = vst.msk [vmem:[#allocation2 + $0x20] sm:$0xff] %vm554_vm4, %v2810_v48  ;;  %v2811_v28 = vadd.f32 %v3597_v60, %v2795_v62  ;;  %v2865_v5 = vadd.f32 (!%p3337_p0), %v3338_v53, %v2842_v39  ;;  %v2845_v19 = vld [vmem:[#allocation2 + $0x18] sm:$0xff] (!%p3337_p0) }
 0x22c   : > { %2829 = vst.msk [vmem:[#allocation2 + $0x38] sm:$0xff] %vm554_vm4, %v2813_v11  ;;  %v2843_v41 = vld [vmem:[#allocation2 + $0x8] sm:$0xff] (!%p3337_p0)  ;;  %v2868_v45 = vadd.f32 (!%p3337_p0), %v3338_v53, %v2845_v19  ;;  %2883 = vst.msk [vmem:[%s4475_s10 + $0x10] sm:$0xff] (!%p3337_p0), %vm554_vm4, %v2867_v52 }
 0x22d   : > { %2827 = vst.msk [vmem:[#allocation2 + $0x28] sm:$0xff] %vm554_vm4, %v2811_v28  ;;  %v3582_v6 = vpop.f32.mrb[8].mxu0  ;;  %v2866_v55 = vadd.f32 (!%p3337_p0), %v3338_v53, %v2843_v41  ;;  %2881 = vst.msk [vmem:[%s4475_s10] sm:$0xff] (!%p3337_p0), %vm554_vm4, %v2865_v5 }
 0x22e   : > { %v3510_v49 = vpop.f32.mrb[8].mxu1  ;;  %v2743_v31 = vpop.f32.mrb[9].mxu0  ;;  %2884 = vst.msk [vmem:[%s4475_s10 + $0x18] sm:$0xff] (!%p3337_p0), %vm554_vm4, %v2868_v45 }
 0x22f   : > { %v3598_v46 = vadd.f32 %v3582_v6, %v3510_v49  ;;  %v1638_v23 = vpop.f32.mrb[9].mxu1  ;;  %v3583_v13 = vpop.f32.mrb[10].mxu0  ;;  %2882 = vst.msk [vmem:[%s4475_s10 + $0x8] sm:$0xff] (!%p3337_p0), %vm554_vm4, %v2866_v55 }
 0x230   : > { %v3599_v42 = vadd.f32 %v2743_v31, %v1638_v23  ;;  %v3511_v61 = vpop.f32.mrb[10].mxu1  ;;  %v2746_v47 = vpop.f32.mrb[11].mxu0 }
 0x231   : > { %v2816_v14 = vadd.f32 %v3598_v46, %v2800_v0  ;;  %v3600_v20 = vadd.f32 %v3583_v13, %v3511_v61  ;;  %v1641_v27 = vpop.f32.mrb[11].mxu1  ;;  %v2848_v63 = vld [vmem:[#allocation2 + $0x30] sm:$0xff] (!%p3337_p0) }
 0x232   : > { %v2814_v37 = vadd.f32 %v3599_v42, %v2798_v22  ;;  %v3601_v9 = vadd.f32 %v2746_v47, %v1641_v27  ;;  %v2846_v26 = vld [vmem:[#allocation2 + $0x20] sm:$0xff] (!%p3337_p0)  ;;  %v2871_v32 = vadd.f32 (!%p3337_p0), %v3338_v53, %v2848_v63 }
 0x233   : > { %2832 = vst.msk [vmem:[#allocation2 + $0x50] sm:$0xff] %vm554_vm4, %v2816_v14  ;;  %v2817_v15 = vadd.f32 %v3600_v20, %v2801_v56  ;;  %v2869_v30 = vadd.f32 (!%p3337_p0), %v3338_v53, %v2846_v26  ;;  %v2849_v25 = vld [vmem:[#allocation2 + $0x38] sm:$0xff] (!%p3337_p0) }
 0x234   : > { %2830 = vst.msk [vmem:[#allocation2 + $0x40] sm:$0xff] %vm554_vm4, %v2814_v37  ;;  %v2815_v57 = vadd.f32 %v3601_v9, %v2799_v17  ;;  %v2847_v16 = vld [vmem:[#allocation2 + $0x28] sm:$0xff] (!%p3337_p0)  ;;  %v2872_v12 = vadd.f32 (!%p3337_p0), %v3338_v53, %v2849_v25  ;;  %2887 = vst.msk [vmem:[%s4475_s10 + $0x30] sm:$0xff] (!%p3337_p0), %vm554_vm4, %v2871_v32 }
 0x235   : > { %2833 = vst.msk [vmem:[#allocation2 + $0x58] sm:$0xff] %vm554_vm4, %v2817_v15  ;;  %v3586_v1 = vpop.f32.mrb[12].mxu0  ;;  %v2870_v34 = vadd.f32 (!%p3337_p0), %v3338_v53, %v2847_v16  ;;  %2885 = vst.msk [vmem:[%s4475_s10 + $0x20] sm:$0xff] (!%p3337_p0), %vm554_vm4, %v2869_v30 }
 0x236   : > { %2831 = vst.msk [vmem:[#allocation2 + $0x48] sm:$0xff] %vm554_vm4, %v2815_v57  ;;  %v3514_v50 = vpop.f32.mrb[12].mxu1  ;;  %v2759_v36 = vpop.f32.mrb[13].mxu0  ;;  %2888 = vst.msk [vmem:[%s4475_s10 + $0x38] sm:$0xff] (!%p3337_p0), %vm554_vm4, %v2872_v12 }
 0x237   : > { %v3602_v8 = vadd.f32 %v3586_v1, %v3514_v50  ;;  %v1654_v51 = vpop.f32.mrb[13].mxu1  ;;  %v3587_v4 = vpop.f32.mrb[14].mxu0  ;;  %2886 = vst.msk [vmem:[%s4475_s10 + $0x28] sm:$0xff] (!%p3337_p0), %vm554_vm4, %v2870_v34 }
 0x238   : > { %v3603_v54 = vadd.f32 %v2759_v36, %v1654_v51  ;;  %v3515_v58 = vpop.f32.mrb[14].mxu1  ;;  %v2762_v35 = vpop.f32.mrb[15].mxu0  ;;  %2841 = sbr.rel (%p3337_p0) target bundleno = 585 (0x249), region = 52 }
 0x239   : > { %v2820_v44 = vadd.f32 %v3602_v8, %v2804_v40  ;;  %v3604_v2 = vadd.f32 %v3587_v4, %v3515_v58  ;;  %v1657_v29 = vpop.f32.mrb[15].mxu1 }
 0x23a   : > { %v2818_v24 = vadd.f32 %v3603_v54, %v2802_v21  ;;  %v3605_v33 = vadd.f32 %v2762_v35, %v1657_v29  ;;  %v2852_v62 = vld [vmem:[#allocation2 + $0x50] sm:$0xff] (!%p3337_p0) }
 0x23b   : > { %2836 = vst.msk [vmem:[#allocation2 + $0x70] sm:$0xff] %vm554_vm4, %v2820_v44  ;;  %v2821_v43 = vadd.f32 %v3604_v2, %v2805_v3  ;;  %v2850_v18 = vld [vmem:[#allocation2 + $0x40] sm:$0xff] (!%p3337_p0)  ;;  %v2875_v11 = vadd.f32 (!%p3337_p0), %v3338_v53, %v2852_v62 }
 0x23c   : > { %2834 = vst.msk [vmem:[#allocation2 + $0x60] sm:$0xff] %vm554_vm4, %v2818_v24  ;;  %v2819_v59 = vadd.f32 %v3605_v33, %v2803_v7  ;;  %v2873_v48 = vadd.f32 (!%p3337_p0), %v3338_v53, %v2850_v18  ;;  %v2853_v28 = vld [vmem:[#allocation2 + $0x58] sm:$0xff] (!%p3337_p0) }
 0x23d   : > { %2837 = vst.msk [vmem:[#allocation2 + $0x78] sm:$0xff] %vm554_vm4, %v2821_v43  ;;  %v2851_v10 = vld [vmem:[#allocation2 + $0x48] sm:$0xff] (!%p3337_p0)  ;;  %v2876_v0 = vadd.f32 (!%p3337_p0), %v3338_v53, %v2853_v28  ;;  %2891 = vst.msk [vmem:[%s4475_s10 + $0x50] sm:$0xff] (!%p3337_p0), %vm554_vm4, %v2875_v11 }
 0x23e   : > { %2835 = vst.msk [vmem:[#allocation2 + $0x68] sm:$0xff] %vm554_vm4, %v2819_v59  ;;  %v2874_v60 = vadd.f32 (!%p3337_p0), %v3338_v53, %v2851_v10  ;;  %2889 = vst.msk [vmem:[%s4475_s10 + $0x40] sm:$0xff] (!%p3337_p0), %vm554_vm4, %v2873_v48 }
 0x23f   : > { %2892 = vst.msk [vmem:[%s4475_s10 + $0x58] sm:$0xff] %vm554_vm4, %v2876_v0 }
 0x240   : > { %2890 = vst.msk [vmem:[%s4475_s10 + $0x48] sm:$0xff] %vm554_vm4, %v2874_v60 }
 0x242   : > { %v2856_v23 = vld [vmem:[#allocation2 + $0x70] sm:$0xff] }
 0x243   : > { %v2854_v6 = vld [vmem:[#allocation2 + $0x60] sm:$0xff]  ;;  %v2879_v13 = vadd.f32 %v3338_v53, %v2856_v23 }
 0x244   : > { %v2877_v31 = vadd.f32 %v3338_v53, %v2854_v6  ;;  %v2857_v22 = vld [vmem:[#allocation2 + $0x78] sm:$0xff] }
 0x245   : > { %v2855_v49 = vld [vmem:[#allocation2 + $0x68] sm:$0xff]  ;;  %v2880_v42 = vadd.f32 %v3338_v53, %v2857_v22  ;;  %2895 = vst.msk [vmem:[%s4475_s10 + $0x70] sm:$0xff] %vm554_vm4, %v2879_v13 }
 0x246   : > { %v2878_v46 = vadd.f32 %v3338_v53, %v2855_v49  ;;  %2893 = vst.msk [vmem:[%s4475_s10 + $0x60] sm:$0xff] %vm554_vm4, %v2877_v31 }
 0x247   : > { %2896 = vst.msk [vmem:[%s4475_s10 + $0x78] sm:$0xff] %vm554_vm4, %v2880_v42 }
 0x248   : > { %2894 = vst.msk [vmem:[%s4475_s10 + $0x68] sm:$0xff] %vm554_vm4, %v2878_v46 }
 0x249 PF: > { %s5523_s26 = sld [smem:[#allocation18_spill]]  ;;  %s5525_s6 = sld [smem:[#allocation21_spill]] }
 0x24a   : > { %s5526_s4 = sld [smem:[#allocation26_spill]]  ;;  %s2913_s0 = sshll.u32 %s4475_s10, 4  ;;  %s5368_s0 = int_to_ptr.vmem [resolvable:$true] %s2913_s0 }
 0x24b   : > { %s5372_s16 = scalar_lea.sflag [#allocation5], %s270_s9  ;;  %s3993_s8 = scalar_lea.vmem %s5368_s0, 2048 }
 0x24c   : > { %p3994_p3 = scmp.ne.s32.totalorder %s5368_s0, %s3993_s8  ;;  %s4155_s5 = smov [#allocation9]  }
 0x24d   : > { %s3997_s29 = sshll.u32 %s4155_s5, 4  ;;  %s3998_s29 = int_to_ptr.vmem [resolvable:$false] %s3997_s29 }
 0x24e   : > { %s3999_s2 = scalar_lea.vmem %s3998_s29, 4096  ;;  %p4000_p7 = scmp.lt.s32.totalorder %s5368_s0, %s3998_s29 }
 0x24f   : > { %s3344_s27 = sshll.u32 %s5523_s26, 11  ;;  %p5527_p2 = scmp.ne.s32.totalorder %s5525_s6, 0 }
 0x250   : > { %s5365_s11 = scalar_lea.hbm %s5526_s4, %s3344_s27  ;;  %p4001_p1 = scmp.lt.s32.totalorder %s3999_s2, %s3993_s8 }
 0x251   : > { %p3995_p5 = pnand %p3994_p3, %p5527_p2 }
 0x252   : > { %p4002_p4 = por %p4001_p1, %p4000_p7 }
 0x253   : > { %p3996_p11 = pneg %p3995_p5 }
 0x255   : > { %p4003_p6 = pnand %p4002_p4, %p3996_p11 }
 0x257   : > { %4006 = shalt.err (!%p4003_p6)
}
 0x258   : > { %s4007_s9 = scalar_lea.hbm %s5365_s11, 2048  ;;  %s4011_s3 = scalar_lea.hbm %s5526_s4, 8192 }
 0x259   : > { %p4008_p12 = scmp.ne.s32.totalorder %s5365_s11, %s4007_s9  ;;  %p4012_p9 = scmp.lt.u32.totalorder %s5365_s11, %s5526_s4 }
 0x25a   : > { %p4013_p10 = scmp.lt.u32.totalorder %s4011_s3, %s4007_s9  ;;  %p4015_p3 = scmp.lt.u32.totalorder %s4007_s9, %s5365_s11 }
 0x25b   : > { %p4009_p13 = pnand %p4008_p12, %p5527_p2 }
 0x25c   : > { %p4014_p0 = por %p4013_p10, %p4012_p9 }
 0x25d   : > { %p4010_p8 = pneg %p4009_p13 }
 0x25e   : > { %p4016_p5 = por %p4015_p3, %p4014_p0 }
 0x260   : > { %p4017_p11 = pnand %p4016_p5, %p4010_p8 }
 0x262   : > { %4020 = shalt.err (!%p4017_p11)
}
 0x263   : > { %s4156_s27 = smov 128   ;;  %s4157_s15 = smov 8  }
 0x264   : > { %3732 = dma.vmem_to_hbm [thread:$0]  (%p5527_p2), %s5368_s0, 2048, %s5365_s11, %s5372_s16, %s4156_s27, %s4156_s27, %s4157_s15  }
 0x265 PF: > { %s5528_s18 = sld [smem:[#allocation14_spill]]  ;;  %s5529_s8 = sld [smem:[#allocation22_spill]] }
 0x266   : > { %p3752_p7 = scmp.ge.s32.totalorder %s4147_s25, 2 }
 0x26b   : > { %s2928_s5 = sand.u32 1, %s5528_s18   ;;  %p5530_p1 = scmp.ne.s32.totalorder %s5529_s8, 0 }
 0x26c   : > { %s2929_s29 = scalar_lea.sflag [#allocation5], %s2928_s5 }
 0x26d   : > { %p3746_p4 = pnand %p3752_p7, %p5530_p1 }
 0x26f   : > { %4090 = dma.done.wait (!%p3746_p4), %s2929_s29, 2048  }
 0x270   : > { %4092 = vsyncadd (!%p3746_p4), %s2929_s29, 4294965248  ;;  %s22_s25 = sadd.s32 1, %s4147_s25   ;;  %s5532_s9 = sld [smem:[#allocation15_spill]] }
 0x271   : > { %p5401_p6 = scmp.ge.s32.totalorder %s22_s25, 14   ;;  %s5533_s15 = sld [smem:[#allocation16_spill]] }
 0x272   : > { %s5534_s6 = smov %s4362_s13  ;;  %s5535_s11 = smov %s5549_s12 }
 0x273   : > { %s5537_s13 = smov %s4103_s14  ;;  %s5538_s14 = smov %s4359_s21 }
 0x274   : > { %s5539_s16 = smov %s4115_s17  ;;  %s5540_s17 = smov %s4350_s30 }
 0x275   : > { %s5541_s18 = smov %s4123_s19  ;;  %s5542_s19 = smov %s4127_s20 }
 0x276   : > { %s5536_s12 = smov %s5532_s9  ;;  %s5543_s20 = smov %s5534_s6 }
 0x277   : > { %s5544_s21 = smov %s4139_s23  ;;  %s5545_s22 = smov %s4143_s24 }
 0x278   : > { %s5546_s23 = smov %s5535_s11  ;;  %s5547_s24 = smov %s5553_s7 }
 0x279   :  { %21 = sbr.rel (!%p5401_p6) target bundleno = 16 (0x10), region = 112 }
 0x280   :  { %2934 = vsyncpa [#allocation4], 1 }
 0x281   :  { %2936 = vsyncpa [#allocation4 + $0x1], 1 }
 0x282   :  { %2937 = vsyncpa [#allocation7], 1 }
 0x283   :  { %2939 = vsyncpa [#allocation7 + $0x1], 1 }
 0x284   :  { %2940 = vsyncpa [#allocation5], 1 }
 0x285   :  { %2942 = vsyncpa [#allocation5 + $0x1], 1 }

</bundles_post_ra>
